<compile_context>
chip_gen: v5e
topology: v5e:2x2
jax: 0.10.0
libtpu: 0.0.40
codegen_flags: <defaults>
</compile_context>

<pallas_src>
import math
import numpy as np
import jax
import jax.numpy as jnp
from jax.experimental import pallas as pl
from jax.experimental.pallas import tpu as pltpu

# ----------------------- model dimensions (small, synthetic) ----------------
B, T, D = 2, 16, 32          # batch, seq len, hidden
H = 4                        # attention heads
DH = D // H                  # head dim
FF = 4 * D                   # MLP hidden
DEPTH = 2                    # number of blocks
EPS = 1e-5
M = B * T                    # rows after folding batch into the matmul M dim
HM = H * M                   # packed key axis (heads x rows) = 128 lanes
NEG = -1e9


def _ln(x, g, b):
    mu = jnp.mean(x, axis=-1, keepdims=True)
    var = jnp.mean((x - mu) ** 2, axis=-1, keepdims=True)
    return (x - mu) * jax.lax.rsqrt(var + EPS) * g + b


def _gelu(x):
    # tanh-approximation GELU (used identically in kernel and reference)
    return 0.5 * x * (1.0 + jnp.tanh(
        math.sqrt(2.0 / math.pi) * (x + 0.044715 * x * x * x)))


# ----------------------------- fused Pallas kernel ---------------------------
def encoder_kernel(x_ref,                 # (M, D) activations (batch folded)
                   bias_ref,              # (DEPTH, M, HM) combined attn bias
                   hmask_ref,             # (HM, D) block-diagonal head mask
                   ln1g, ln1b, wqkv, bqkv, wo, bo,   # per-layer params (DEPTH,...)
                   ln2g, ln2b, w1, b1, w2, b2,
                   ng, nb,                # final norm params (1, D)
                   o_ref):                # (M, D) output
    x = x_ref[...]                        # one HBM->VMEM trip for activations
    hmask = hmask_ref[...]                # (HM, D) 0/1 block mask

    for l in range(DEPTH):                # static unroll (DEPTH = 2)
        # ---------------- self attention (pre-LN) ----------------
        h = _ln(x, ln1g[l], ln1b[l])
        # 1/sqrt(DH) is pre-folded into the Q columns of wqkv/bqkv (wrapper).
        qkv = jnp.dot(h, wqkv[l], preferred_element_type=jnp.float32) + bqkv[l]
        q = qkv[:, 0:D]                   # (M, D)
        k = qkv[:, D:2 * D]               # (M, D)
        v = qkv[:, 2 * D:3 * D]           # (M, D)

        # Block-diagonal lane packing: replicate K/V over heads along sublanes
        # and zero out the non-matching head columns.  One dense matmul then
        # produces all heads' scores (lane-dense, 128 lanes) at once.
        kpack = jnp.concatenate([k] * H, axis=0) * hmask      # (HM, D)
        vpack = jnp.concatenate([v] * H, axis=0) * hmask      # (HM, D)

        # scores: s[q, h*M + key] = sum_{d in head h} Q[q,d] * K[key,d]
        s = jax.lax.dot_general(q, kpack, (((1,), (1,)), ((), ())),
                                preferred_element_type=jnp.float32)  # (M, HM)
        # combined bias = scaled alibi + cross-batch block mask + key padding
        s = s + bias_ref[l]

        # Softmax: subtracting any per-row constant cancels exactly in the
        # ratio, so the per-row max over all heads is sufficient (no segmented
        # per-head lane reductions needed).
        mx = jnp.max(s, axis=-1, keepdims=True)
        p = jnp.exp(s - mx)                                    # (M, HM)

        # Unnormalized per-head context (heads land concatenated in lanes) and
        # per-(row, head) softmax denominators via one matmul each.
        ctx = jnp.dot(p, vpack, preferred_element_type=jnp.float32)   # (M, D)
        den = jnp.dot(p, hmask, preferred_element_type=jnp.float32)   # (M, D)
        ctx = ctx / den                                        # exact division

        x = x + jnp.dot(ctx, wo[l], preferred_element_type=jnp.float32) + bo[l]

        # ---------------- MLP (pre-LN) ----------------
        h2 = _ln(x, ln2g[l], ln2b[l])
        ff = _gelu(jnp.dot(h2, w1[l], preferred_element_type=jnp.float32) + b1[l])
        x = x + jnp.dot(ff, w2[l], preferred_element_type=jnp.float32) + b2[l]

    # final norm (layer_norm_first=True) fused; single HBM writeback
    o_ref[...] = _ln(x, ng[...], nb[...])


# ------------------------------ wrapper ---------------------------------------
def _build_bias(padding_mask, alibi_bias, alibi_scale):
    """(DEPTH, M, HM) lane-dense additive bias: scaled alibi + cross-batch
    block mask + key-padding mask, all precomputed outside the kernel."""
    pad_add = jnp.where(padding_mask.reshape(M), NEG, 0.0).astype(jnp.float32)
    row_batch = jnp.arange(M) // T
    cross = jnp.where(row_batch[:, None] == row_batch[None, :],
                      0.0, NEG).astype(jnp.float32)                  # (M, M)

    ab = (jnp.zeros((H, T, T), jnp.float32) if alibi_bias is None
          else alibi_bias.astype(jnp.float32))

    layers = []
    for i in range(DEPTH):
        ab_l = ab
        if alibi_bias is not None and alibi_scale is not None:
            s = (alibi_scale[i] if alibi_scale.shape[0] > 1
                 else jnp.squeeze(alibi_scale, 0))
            # handles scalar-per-layer and per-layer-per-head scales
            s = jnp.reshape(s, (-1, 1, 1)) if s.size > 1 else jnp.reshape(s, ())
            ab_l = ab * s.astype(jnp.float32)
        ab_mm = jnp.tile(ab_l, (1, B, B))                       # (H, M, M)
        bias_hmm = ab_mm + cross[None] + pad_add[None, None, :]  # (H, M, M)
        layers.append(jnp.transpose(bias_hmm, (1, 0, 2)).reshape(M, HM))
    return jnp.stack(layers, axis=0)                             # (DEPTH, M, HM)


def block_encoder_forward(x, padding_mask, alibi_bias, alibi_scale, params):
    """Mirrors BlockEncoder.forward (layer_norm_first=True, eval mode)."""
    # dropout is identity in eval; layerdrop never drops in eval.
    x2 = x.reshape(M, D).astype(jnp.float32)

    bias = _build_bias(padding_mask, alibi_bias, alibi_scale)

    # block-diagonal head mask (HM, D): row h*M+k selects head h's DH columns
    hm = np.zeros((HM, D), np.float32)
    for h in range(H):
        hm[h * M:(h + 1) * M, h * DH:(h + 1) * DH] = 1.0
    hmask = jnp.asarray(hm)

    # fold 1/sqrt(DH) into the Q columns of the fused QKV projection
    qcol_scale = jnp.concatenate(
        [jnp.full((D,), 1.0 / math.sqrt(DH), jnp.float32),
         jnp.ones((2 * D,), jnp.float32)])
    wqkv_s = params["wqkv"] * qcol_scale
    bqkv_s = params["bqkv"] * qcol_scale

    # Single kernel invocation (no grid): everything (~200 KiB) is resident in
    # VMEM, layers are unrolled inside the kernel, no per-step pipeline
    # overhead.  Output is a single (M, D) writeback at the end.
    out = pl.pallas_call(
        encoder_kernel,
        out_shape=jax.ShapeDtypeStruct((M, D), jnp.float32),
    )(x2, bias, hmask,
      params["ln1_g"], params["ln1_b"], wqkv_s, bqkv_s,
      params["wo"], params["bo"], params["ln2_g"], params["ln2_b"],
      params["w1"], params["b1"], params["w2"], params["b2"],
      params["norm_g"], params["norm_b"])
    return out.reshape(B, T, D)


# --------------------------- pure-JAX reference --------------------------------
def reference_forward(x, padding_mask, alibi_bias, alibi_scale, params):
    pad_add = jnp.where(padding_mask, NEG, 0.0).astype(jnp.float32)[:, None, None, :]
    for i in range(DEPTH):
        scale = (alibi_scale[i] if alibi_scale.shape[0] > 1
                 else jnp.squeeze(alibi_scale, 0))
        ab = alibi_bias * scale
        h = _ln(x, params["ln1_g"][i], params["ln1_b"][i])
        qkv = h @ params["wqkv"][i] + params["bqkv"][i]
        q, k, v = jnp.split(qkv, 3, axis=-1)
        qh = q.reshape(B, T, H, DH).transpose(0, 2, 1, 3)
        kh = k.reshape(B, T, H, DH).transpose(0, 2, 1, 3)
        vh = v.reshape(B, T, H, DH).transpose(0, 2, 1, 3)
        s = jnp.einsum('bhqd,bhkd->bhqk', qh, kh) / math.sqrt(DH)
        s = s + ab[None] + pad_add
        a = jax.nn.softmax(s, axis=-1)
        ctx = jnp.einsum('bhqk,bhkd->bhqd', a, vh).transpose(0, 2, 1, 3).reshape(B, T, D)
        x = x + ctx @ params["wo"][i] + params["bo"][i]
        h2 = _ln(x, params["ln2_g"][i], params["ln2_b"][i])
        x = x + _gelu(h2 @ params["w1"][i] + params["b1"][i]) @ params["w2"][i] + params["b2"][i]
    return _ln(x, params["norm_g"], params["norm_b"])


# ------------------------------ param init -------------------------------------
def init_params(key):
    def dense(k, shape, scale=0.05):
        return (scale * jax.random.normal(k, shape)).astype(jnp.float32)

    ks = jax.random.split(key, 9)
    return dict(
        ln1_g=jnp.ones((DEPTH, 1, D), jnp.float32),
        ln1_b=jnp.zeros((DEPTH, 1, D), jnp.float32),
        wqkv=dense(ks[0], (DEPTH, D, 3 * D)),
        bqkv=dense(ks[1], (DEPTH, 1, 3 * D), 0.02),
        wo=dense(ks[2], (DEPTH, D, D)),
        bo=dense(ks[3], (DEPTH, 1, D), 0.02),
        ln2_g=jnp.ones((DEPTH, 1, D), jnp.float32),
        ln2_b=jnp.zeros((DEPTH, 1, D), jnp.float32),
        w1=dense(ks[4], (DEPTH, D, FF)),
        b1=dense(ks[5], (DEPTH, 1, FF), 0.02),
        w2=dense(ks[6], (DEPTH, FF, D)),
        b2=dense(ks[7], (DEPTH, 1, D), 0.02),
        norm_g=jnp.ones((1, D), jnp.float32),
        norm_b=jnp.zeros((1, D), jnp.float32),
    )


def make_alibi_bias():
    # simple alibi-style bias: per-head slope * -(|i-j|)
    slopes = np.array([2.0 ** (-(h + 1)) for h in range(H)], np.float32)
    pos = np.arange(T)
    dist = -np.abs(pos[None, :] - pos[:, None]).astype(np.float32)   # (T, T)
    return jnp.asarray(slopes[:, None, None] * dist[None])            # (H, T, T)


# --------------------------------- main -----------------------------------------
if __name__ == "__main__":
    key = jax.random.PRNGKey(0)
    kx, kp = jax.random.split(key)

    x = jax.random.normal(kx, (B, T, D), dtype=jnp.float32)
    # last 3 positions of batch element 1 are padded
    padding_mask = jnp.zeros((B, T), dtype=bool).at[1, T - 3:].set(True)
    alibi_bias = make_alibi_bias()                        # (H, T, T)
    alibi_scale = jnp.array([[1.0], [0.5]], jnp.float32)  # (DEPTH, 1)

    params = init_params(kp)

    out = block_encoder_forward(x, padding_mask, alibi_bias, alibi_scale, params)
    out = jax.block_until_ready(out)

    ref = reference_forward(x, padding_mask, alibi_bias, alibi_scale, params)
    assert out.shape == (B, T, D)
    np.testing.assert_allclose(np.asarray(out), np.asarray(ref),
                               rtol=1e-4, atol=1e-4)
    print("KERNEL_OK")
</pallas_src>

<mosaic_0001>
module attributes {stable_mosaic.version = 11 : i64} {
  func.func @encoder_kernel(%arg0: memref<32x32xf32, #tpu.memory_space<vmem>>, %arg1: memref<2x32x128xf32, #tpu.memory_space<vmem>>, %arg2: memref<128x32xf32, #tpu.memory_space<vmem>>, %arg3: memref<2x1x32xf32, #tpu.memory_space<vmem>>, %arg4: memref<2x1x32xf32, #tpu.memory_space<vmem>>, %arg5: memref<2x32x96xf32, #tpu.memory_space<vmem>>, %arg6: memref<2x1x96xf32, #tpu.memory_space<vmem>>, %arg7: memref<2x32x32xf32, #tpu.memory_space<vmem>>, %arg8: memref<2x1x32xf32, #tpu.memory_space<vmem>>, %arg9: memref<2x1x32xf32, #tpu.memory_space<vmem>>, %arg10: memref<2x1x32xf32, #tpu.memory_space<vmem>>, %arg11: memref<2x32x128xf32, #tpu.memory_space<vmem>>, %arg12: memref<2x1x128xf32, #tpu.memory_space<vmem>>, %arg13: memref<2x128x32xf32, #tpu.memory_space<vmem>>, %arg14: memref<2x1x32xf32, #tpu.memory_space<vmem>>, %arg15: memref<1x32xf32, #tpu.memory_space<vmem>>, %arg16: memref<1x32xf32, #tpu.memory_space<vmem>>, %arg17: memref<32x32xf32, #tpu.memory_space<vmem>>) attributes {dimension_semantics = [], scalar_prefetch = 0 : i64, scratch_operands = 0 : i64, tpu.core_type = #tpu.core_type<tc>} {
    %c0 = arith.constant 0 : index
    %c0_0 = arith.constant 0 : index
    %0 = vector.load %arg0[%c0, %c0_0] : memref<32x32xf32, #tpu.memory_space<vmem>>, vector<32x32xf32>
    %c0_1 = arith.constant 0 : index
    %c0_2 = arith.constant 0 : index
    %1 = vector.load %arg2[%c0_1, %c0_2] : memref<128x32xf32, #tpu.memory_space<vmem>>, vector<128x32xf32>
    %c0_3 = arith.constant 0 : index
    %c0_4 = arith.constant 0 : index
    %c0_5 = arith.constant 0 : index
    %2 = vector.load %arg3[%c0_3, %c0_4, %c0_5] : memref<2x1x32xf32, #tpu.memory_space<vmem>>, vector<1x1x32xf32>
    %3 = vector.shape_cast %2 : vector<1x1x32xf32> to vector<1x32xf32>
    %c0_6 = arith.constant 0 : index
    %c0_7 = arith.constant 0 : index
    %c0_8 = arith.constant 0 : index
    %4 = vector.load %arg4[%c0_6, %c0_7, %c0_8] : memref<2x1x32xf32, #tpu.memory_space<vmem>>, vector<1x1x32xf32>
    %5 = vector.shape_cast %4 : vector<1x1x32xf32> to vector<1x32xf32>
    %cst = arith.constant dense<0.000000e+00> : vector<32xf32>
    %6 = vector.multi_reduction <add>, %0, %cst [1] : vector<32x32xf32> to vector<32xf32>
    %7 = vector.shape_cast %6 : vector<32xf32> to vector<32x1xf32>
    %cst_9 = arith.constant 3.200000e+01 : f32
    %8 = vector.broadcast %cst_9 : f32 to vector<32x1xf32>
    %9 = arith.divf %7, %8 : vector<32x1xf32>
    %10 = vector.broadcast %9 : vector<32x1xf32> to vector<32x32xf32>
    %11 = arith.subf %0, %10 : vector<32x32xf32>
    %12 = arith.mulf %11, %11 : vector<32x32xf32>
    %cst_10 = arith.constant dense<0.000000e+00> : vector<32xf32>
    %13 = vector.multi_reduction <add>, %12, %cst_10 [1] : vector<32x32xf32> to vector<32xf32>
    %14 = vector.shape_cast %13 : vector<32xf32> to vector<32x1xf32>
    %cst_11 = arith.constant 3.200000e+01 : f32
    %15 = vector.broadcast %cst_11 : f32 to vector<32x1xf32>
    %16 = arith.divf %14, %15 : vector<32x1xf32>
    %17 = vector.broadcast %9 : vector<32x1xf32> to vector<32x32xf32>
    %18 = arith.subf %0, %17 : vector<32x32xf32>
    %cst_12 = arith.constant 9.99999974E-6 : f32
    %19 = vector.broadcast %cst_12 : f32 to vector<32x1xf32>
    %20 = arith.addf %16, %19 : vector<32x1xf32>
    %21 = math.rsqrt %20 : vector<32x1xf32>
    %22 = vector.broadcast %21 : vector<32x1xf32> to vector<32x32xf32>
    %23 = arith.mulf %18, %22 : vector<32x32xf32>
    %24 = vector.broadcast %3 : vector<1x32xf32> to vector<32x32xf32>
    %25 = arith.mulf %23, %24 : vector<32x32xf32>
    %26 = vector.broadcast %5 : vector<1x32xf32> to vector<32x32xf32>
    %27 = arith.addf %25, %26 : vector<32x32xf32>
    %c0_13 = arith.constant 0 : index
    %c0_14 = arith.constant 0 : index
    %c0_15 = arith.constant 0 : index
    %28 = vector.load %arg5[%c0_13, %c0_14, %c0_15] : memref<2x32x96xf32, #tpu.memory_space<vmem>>, vector<1x32x96xf32>
    %29 = vector.shape_cast %28 : vector<1x32x96xf32> to vector<32x96xf32>
    %cst_16 = arith.constant dense<0.000000e+00> : vector<32x96xf32>
    %30 = tpu.matmul %27, %29, %cst_16 {dimension_numbers = #tpu.dot_dimension_numbers<[1], [0], [0], [1], [0, 0, 1, 1], [], []>} : vector<32x32xf32>, vector<32x96xf32>, vector<32x96xf32> -> vector<32x96xf32>
    %c0_17 = arith.constant 0 : index
    %c0_18 = arith.constant 0 : index
    %c0_19 = arith.constant 0 : index
    %31 = vector.load %arg6[%c0_17, %c0_18, %c0_19] : memref<2x1x96xf32, #tpu.memory_space<vmem>>, vector<1x1x96xf32>
    %32 = vector.shape_cast %31 : vector<1x1x96xf32> to vector<1x96xf32>
    %33 = vector.broadcast %32 : vector<1x96xf32> to vector<32x96xf32>
    %34 = arith.addf %30, %33 : vector<32x96xf32>
    %35 = vector.extract_strided_slice %34 {offsets = [0, 0], sizes = [32, 32], strides = [1, 1]} : vector<32x96xf32> to vector<32x32xf32>
    %36 = vector.extract_strided_slice %34 {offsets = [0, 32], sizes = [32, 32], strides = [1, 1]} : vector<32x96xf32> to vector<32x32xf32>
    %37 = vector.extract_strided_slice %34 {offsets = [0, 64], sizes = [32, 32], strides = [1, 1]} : vector<32x96xf32> to vector<32x32xf32>
    %38 = tpu.concatenate %36, %36, %36, %36 in 0 : vector<32x32xf32>, vector<32x32xf32>, vector<32x32xf32>, vector<32x32xf32> -> vector<128x32xf32>
    %39 = arith.mulf %38, %1 : vector<128x32xf32>
    %40 = tpu.concatenate %37, %37, %37, %37 in 0 : vector<32x32xf32>, vector<32x32xf32>, vector<32x32xf32>, vector<32x32xf32> -> vector<128x32xf32>
    %41 = arith.mulf %40, %1 : vector<128x32xf32>
    %cst_20 = arith.constant dense<0.000000e+00> : vector<32x128xf32>
    %42 = tpu.matmul %35, %39, %cst_20 {dimension_numbers = #tpu.dot_dimension_numbers<[1], [1], [0], [0], [0, 0, 1, 0], [], []>} : vector<32x32xf32>, vector<128x32xf32>, vector<32x128xf32> -> vector<32x128xf32>
    %c0_21 = arith.constant 0 : index
    %c0_22 = arith.constant 0 : index
    %c0_23 = arith.constant 0 : index
    %43 = vector.load %arg1[%c0_21, %c0_22, %c0_23] : memref<2x32x128xf32, #tpu.memory_space<vmem>>, vector<1x32x128xf32>
    %44 = vector.shape_cast %43 : vector<1x32x128xf32> to vector<32x128xf32>
    %45 = arith.addf %42, %44 : vector<32x128xf32>
    %cst_24 = arith.constant dense<0xFF800000> : vector<32xf32>
    %46 = vector.multi_reduction <maximumf>, %45, %cst_24 [1] : vector<32x128xf32> to vector<32xf32>
    %47 = vector.shape_cast %46 : vector<32xf32> to vector<32x1xf32>
    %48 = vector.broadcast %47 : vector<32x1xf32> to vector<32x128xf32>
    %49 = arith.subf %45, %48 : vector<32x128xf32>
    %50 = math.exp %49 : vector<32x128xf32>
    %cst_25 = arith.constant dense<0.000000e+00> : vector<32x32xf32>
    %51 = tpu.matmul %50, %41, %cst_25 {dimension_numbers = #tpu.dot_dimension_numbers<[1], [0], [0], [1], [0, 0, 1, 1], [], []>} : vector<32x128xf32>, vector<128x32xf32>, vector<32x32xf32> -> vector<32x32xf32>
    %cst_26 = arith.constant dense<0.000000e+00> : vector<32x32xf32>
    %52 = tpu.matmul %50, %1, %cst_26 {dimension_numbers = #tpu.dot_dimension_numbers<[1], [0], [0], [1], [0, 0, 1, 1], [], []>} : vector<32x128xf32>, vector<128x32xf32>, vector<32x32xf32> -> vector<32x32xf32>
    %53 = arith.divf %51, %52 : vector<32x32xf32>
    %c0_27 = arith.constant 0 : index
    %c0_28 = arith.constant 0 : index
    %c0_29 = arith.constant 0 : index
    %54 = vector.load %arg7[%c0_27, %c0_28, %c0_29] : memref<2x32x32xf32, #tpu.memory_space<vmem>>, vector<1x32x32xf32>
    %55 = vector.shape_cast %54 : vector<1x32x32xf32> to vector<32x32xf32>
    %cst_30 = arith.constant dense<0.000000e+00> : vector<32x32xf32>
    %56 = tpu.matmul %53, %55, %cst_30 {dimension_numbers = #tpu.dot_dimension_numbers<[1], [0], [0], [1], [0, 0, 1, 1], [], []>} : vector<32x32xf32>, vector<32x32xf32>, vector<32x32xf32> -> vector<32x32xf32>
    %57 = arith.addf %0, %56 : vector<32x32xf32>
    %c0_31 = arith.constant 0 : index
    %c0_32 = arith.constant 0 : index
    %c0_33 = arith.constant 0 : index
    %58 = vector.load %arg8[%c0_31, %c0_32, %c0_33] : memref<2x1x32xf32, #tpu.memory_space<vmem>>, vector<1x1x32xf32>
    %59 = vector.shape_cast %58 : vector<1x1x32xf32> to vector<1x32xf32>
    %60 = vector.broadcast %59 : vector<1x32xf32> to vector<32x32xf32>
    %61 = arith.addf %57, %60 : vector<32x32xf32>
    %c0_34 = arith.constant 0 : index
    %c0_35 = arith.constant 0 : index
    %c0_36 = arith.constant 0 : index
    %62 = vector.load %arg9[%c0_34, %c0_35, %c0_36] : memref<2x1x32xf32, #tpu.memory_space<vmem>>, vector<1x1x32xf32>
    %63 = vector.shape_cast %62 : vector<1x1x32xf32> to vector<1x32xf32>
    %c0_37 = arith.constant 0 : index
    %c0_38 = arith.constant 0 : index
    %c0_39 = arith.constant 0 : index
    %64 = vector.load %arg10[%c0_37, %c0_38, %c0_39] : memref<2x1x32xf32, #tpu.memory_space<vmem>>, vector<1x1x32xf32>
    %65 = vector.shape_cast %64 : vector<1x1x32xf32> to vector<1x32xf32>
    %cst_40 = arith.constant dense<0.000000e+00> : vector<32xf32>
    %66 = vector.multi_reduction <add>, %61, %cst_40 [1] : vector<32x32xf32> to vector<32xf32>
    %67 = vector.shape_cast %66 : vector<32xf32> to vector<32x1xf32>
    %cst_41 = arith.constant 3.200000e+01 : f32
    %68 = vector.broadcast %cst_41 : f32 to vector<32x1xf32>
    %69 = arith.divf %67, %68 : vector<32x1xf32>
    %70 = vector.broadcast %69 : vector<32x1xf32> to vector<32x32xf32>
    %71 = arith.subf %61, %70 : vector<32x32xf32>
    %72 = arith.mulf %71, %71 : vector<32x32xf32>
    %cst_42 = arith.constant dense<0.000000e+00> : vector<32xf32>
    %73 = vector.multi_reduction <add>, %72, %cst_42 [1] : vector<32x32xf32> to vector<32xf32>
    %74 = vector.shape_cast %73 : vector<32xf32> to vector<32x1xf32>
    %cst_43 = arith.constant 3.200000e+01 : f32
    %75 = vector.broadcast %cst_43 : f32 to vector<32x1xf32>
    %76 = arith.divf %74, %75 : vector<32x1xf32>
    %77 = vector.broadcast %69 : vector<32x1xf32> to vector<32x32xf32>
    %78 = arith.subf %61, %77 : vector<32x32xf32>
    %cst_44 = arith.constant 9.99999974E-6 : f32
    %79 = vector.broadcast %cst_44 : f32 to vector<32x1xf32>
    %80 = arith.addf %76, %79 : vector<32x1xf32>
    %81 = math.rsqrt %80 : vector<32x1xf32>
    %82 = vector.broadcast %81 : vector<32x1xf32> to vector<32x32xf32>
    %83 = arith.mulf %78, %82 : vector<32x32xf32>
    %84 = vector.broadcast %63 : vector<1x32xf32> to vector<32x32xf32>
    %85 = arith.mulf %83, %84 : vector<32x32xf32>
    %86 = vector.broadcast %65 : vector<1x32xf32> to vector<32x32xf32>
    %87 = arith.addf %85, %86 : vector<32x32xf32>
    %c0_45 = arith.constant 0 : index
    %c0_46 = arith.constant 0 : index
    %c0_47 = arith.constant 0 : index
    %88 = vector.load %arg11[%c0_45, %c0_46, %c0_47] : memref<2x32x128xf32, #tpu.memory_space<vmem>>, vector<1x32x128xf32>
    %89 = vector.shape_cast %88 : vector<1x32x128xf32> to vector<32x128xf32>
    %cst_48 = arith.constant dense<0.000000e+00> : vector<32x128xf32>
    %90 = tpu.matmul %87, %89, %cst_48 {dimension_numbers = #tpu.dot_dimension_numbers<[1], [0], [0], [1], [0, 0, 1, 1], [], []>} : vector<32x32xf32>, vector<32x128xf32>, vector<32x128xf32> -> vector<32x128xf32>
    %c0_49 = arith.constant 0 : index
    %c0_50 = arith.constant 0 : index
    %c0_51 = arith.constant 0 : index
    %91 = vector.load %arg12[%c0_49, %c0_50, %c0_51] : memref<2x1x128xf32, #tpu.memory_space<vmem>>, vector<1x1x128xf32>
    %92 = vector.shape_cast %91 : vector<1x1x128xf32> to vector<1x128xf32>
    %93 = vector.broadcast %92 : vector<1x128xf32> to vector<32x128xf32>
    %94 = arith.addf %90, %93 : vector<32x128xf32>
    %cst_52 = arith.constant 5.000000e-01 : f32
    %95 = vector.broadcast %cst_52 : f32 to vector<32x128xf32>
    %96 = arith.mulf %95, %94 : vector<32x128xf32>
    %cst_53 = arith.constant 4.471500e-02 : f32
    %97 = vector.broadcast %cst_53 : f32 to vector<32x128xf32>
    %98 = arith.mulf %97, %94 : vector<32x128xf32>
    %99 = arith.mulf %98, %94 : vector<32x128xf32>
    %100 = arith.mulf %99, %94 : vector<32x128xf32>
    %101 = arith.addf %94, %100 : vector<32x128xf32>
    %cst_54 = arith.constant 0.797884583 : f32
    %102 = vector.broadcast %cst_54 : f32 to vector<32x128xf32>
    %103 = arith.mulf %102, %101 : vector<32x128xf32>
    %104 = math.tanh %103 : vector<32x128xf32>
    %cst_55 = arith.constant 1.000000e+00 : f32
    %105 = vector.broadcast %cst_55 : f32 to vector<32x128xf32>
    %106 = arith.addf %105, %104 : vector<32x128xf32>
    %107 = arith.mulf %96, %106 : vector<32x128xf32>
    %c0_56 = arith.constant 0 : index
    %c0_57 = arith.constant 0 : index
    %c0_58 = arith.constant 0 : index
    %108 = vector.load %arg13[%c0_56, %c0_57, %c0_58] : memref<2x128x32xf32, #tpu.memory_space<vmem>>, vector<1x128x32xf32>
    %109 = vector.shape_cast %108 : vector<1x128x32xf32> to vector<128x32xf32>
    %cst_59 = arith.constant dense<0.000000e+00> : vector<32x32xf32>
    %110 = tpu.matmul %107, %109, %cst_59 {dimension_numbers = #tpu.dot_dimension_numbers<[1], [0], [0], [1], [0, 0, 1, 1], [], []>} : vector<32x128xf32>, vector<128x32xf32>, vector<32x32xf32> -> vector<32x32xf32>
    %111 = arith.addf %61, %110 : vector<32x32xf32>
    %c0_60 = arith.constant 0 : index
    %c0_61 = arith.constant 0 : index
    %c0_62 = arith.constant 0 : index
    %112 = vector.load %arg14[%c0_60, %c0_61, %c0_62] : memref<2x1x32xf32, #tpu.memory_space<vmem>>, vector<1x1x32xf32>
    %113 = vector.shape_cast %112 : vector<1x1x32xf32> to vector<1x32xf32>
    %114 = vector.broadcast %113 : vector<1x32xf32> to vector<32x32xf32>
    %115 = arith.addf %111, %114 : vector<32x32xf32>
    %c1 = arith.constant 1 : index
    %c0_63 = arith.constant 0 : index
    %c0_64 = arith.constant 0 : index
    %116 = vector.load %arg3[%c1, %c0_63, %c0_64] : memref<2x1x32xf32, #tpu.memory_space<vmem>>, vector<1x1x32xf32>
    %117 = vector.shape_cast %116 : vector<1x1x32xf32> to vector<1x32xf32>
    %c1_65 = arith.constant 1 : index
    %c0_66 = arith.constant 0 : index
    %c0_67 = arith.constant 0 : index
    %118 = vector.load %arg4[%c1_65, %c0_66, %c0_67] : memref<2x1x32xf32, #tpu.memory_space<vmem>>, vector<1x1x32xf32>
    %119 = vector.shape_cast %118 : vector<1x1x32xf32> to vector<1x32xf32>
    %cst_68 = arith.constant dense<0.000000e+00> : vector<32xf32>
    %120 = vector.multi_reduction <add>, %115, %cst_68 [1] : vector<32x32xf32> to vector<32xf32>
    %121 = vector.shape_cast %120 : vector<32xf32> to vector<32x1xf32>
    %cst_69 = arith.constant 3.200000e+01 : f32
    %122 = vector.broadcast %cst_69 : f32 to vector<32x1xf32>
    %123 = arith.divf %121, %122 : vector<32x1xf32>
    %124 = vector.broadcast %123 : vector<32x1xf32> to vector<32x32xf32>
    %125 = arith.subf %115, %124 : vector<32x32xf32>
    %126 = arith.mulf %125, %125 : vector<32x32xf32>
    %cst_70 = arith.constant dense<0.000000e+00> : vector<32xf32>
    %127 = vector.multi_reduction <add>, %126, %cst_70 [1] : vector<32x32xf32> to vector<32xf32>
    %128 = vector.shape_cast %127 : vector<32xf32> to vector<32x1xf32>
    %cst_71 = arith.constant 3.200000e+01 : f32
    %129 = vector.broadcast %cst_71 : f32 to vector<32x1xf32>
    %130 = arith.divf %128, %129 : vector<32x1xf32>
    %131 = vector.broadcast %123 : vector<32x1xf32> to vector<32x32xf32>
    %132 = arith.subf %115, %131 : vector<32x32xf32>
    %cst_72 = arith.constant 9.99999974E-6 : f32
    %133 = vector.broadcast %cst_72 : f32 to vector<32x1xf32>
    %134 = arith.addf %130, %133 : vector<32x1xf32>
    %135 = math.rsqrt %134 : vector<32x1xf32>
    %136 = vector.broadcast %135 : vector<32x1xf32> to vector<32x32xf32>
    %137 = arith.mulf %132, %136 : vector<32x32xf32>
    %138 = vector.broadcast %117 : vector<1x32xf32> to vector<32x32xf32>
    %139 = arith.mulf %137, %138 : vector<32x32xf32>
    %140 = vector.broadcast %119 : vector<1x32xf32> to vector<32x32xf32>
    %141 = arith.addf %139, %140 : vector<32x32xf32>
    %c1_73 = arith.constant 1 : index
    %c0_74 = arith.constant 0 : index
    %c0_75 = arith.constant 0 : index
    %142 = vector.load %arg5[%c1_73, %c0_74, %c0_75] : memref<2x32x96xf32, #tpu.memory_space<vmem>>, vector<1x32x96xf32>
    %143 = vector.shape_cast %142 : vector<1x32x96xf32> to vector<32x96xf32>
    %cst_76 = arith.constant dense<0.000000e+00> : vector<32x96xf32>
    %144 = tpu.matmul %141, %143, %cst_76 {dimension_numbers = #tpu.dot_dimension_numbers<[1], [0], [0], [1], [0, 0, 1, 1], [], []>} : vector<32x32xf32>, vector<32x96xf32>, vector<32x96xf32> -> vector<32x96xf32>
    %c1_77 = arith.constant 1 : index
    %c0_78 = arith.constant 0 : index
    %c0_79 = arith.constant 0 : index
    %145 = vector.load %arg6[%c1_77, %c0_78, %c0_79] : memref<2x1x96xf32, #tpu.memory_space<vmem>>, vector<1x1x96xf32>
    %146 = vector.shape_cast %145 : vector<1x1x96xf32> to vector<1x96xf32>
    %147 = vector.broadcast %146 : vector<1x96xf32> to vector<32x96xf32>
    %148 = arith.addf %144, %147 : vector<32x96xf32>
    %149 = vector.extract_strided_slice %148 {offsets = [0, 0], sizes = [32, 32], strides = [1, 1]} : vector<32x96xf32> to vector<32x32xf32>
    %150 = vector.extract_strided_slice %148 {offsets = [0, 32], sizes = [32, 32], strides = [1, 1]} : vector<32x96xf32> to vector<32x32xf32>
    %151 = vector.extract_strided_slice %148 {offsets = [0, 64], sizes = [32, 32], strides = [1, 1]} : vector<32x96xf32> to vector<32x32xf32>
    %152 = tpu.concatenate %150, %150, %150, %150 in 0 : vector<32x32xf32>, vector<32x32xf32>, vector<32x32xf32>, vector<32x32xf32> -> vector<128x32xf32>
    %153 = arith.mulf %152, %1 : vector<128x32xf32>
    %154 = tpu.concatenate %151, %151, %151, %151 in 0 : vector<32x32xf32>, vector<32x32xf32>, vector<32x32xf32>, vector<32x32xf32> -> vector<128x32xf32>
    %155 = arith.mulf %154, %1 : vector<128x32xf32>
    %cst_80 = arith.constant dense<0.000000e+00> : vector<32x128xf32>
    %156 = tpu.matmul %149, %153, %cst_80 {dimension_numbers = #tpu.dot_dimension_numbers<[1], [1], [0], [0], [0, 0, 1, 0], [], []>} : vector<32x32xf32>, vector<128x32xf32>, vector<32x128xf32> -> vector<32x128xf32>
    %c1_81 = arith.constant 1 : index
    %c0_82 = arith.constant 0 : index
    %c0_83 = arith.constant 0 : index
    %157 = vector.load %arg1[%c1_81, %c0_82, %c0_83] : memref<2x32x128xf32, #tpu.memory_space<vmem>>, vector<1x32x128xf32>
    %158 = vector.shape_cast %157 : vector<1x32x128xf32> to vector<32x128xf32>
    %159 = arith.addf %156, %158 : vector<32x128xf32>
    %cst_84 = arith.constant dense<0xFF800000> : vector<32xf32>
    %160 = vector.multi_reduction <maximumf>, %159, %cst_84 [1] : vector<32x128xf32> to vector<32xf32>
    %161 = vector.shape_cast %160 : vector<32xf32> to vector<32x1xf32>
    %162 = vector.broadcast %161 : vector<32x1xf32> to vector<32x128xf32>
    %163 = arith.subf %159, %162 : vector<32x128xf32>
    %164 = math.exp %163 : vector<32x128xf32>
    %cst_85 = arith.constant dense<0.000000e+00> : vector<32x32xf32>
    %165 = tpu.matmul %164, %155, %cst_85 {dimension_numbers = #tpu.dot_dimension_numbers<[1], [0], [0], [1], [0, 0, 1, 1], [], []>} : vector<32x128xf32>, vector<128x32xf32>, vector<32x32xf32> -> vector<32x32xf32>
    %cst_86 = arith.constant dense<0.000000e+00> : vector<32x32xf32>
    %166 = tpu.matmul %164, %1, %cst_86 {dimension_numbers = #tpu.dot_dimension_numbers<[1], [0], [0], [1], [0, 0, 1, 1], [], []>} : vector<32x128xf32>, vector<128x32xf32>, vector<32x32xf32> -> vector<32x32xf32>
    %167 = arith.divf %165, %166 : vector<32x32xf32>
    %c1_87 = arith.constant 1 : index
    %c0_88 = arith.constant 0 : index
    %c0_89 = arith.constant 0 : index
    %168 = vector.load %arg7[%c1_87, %c0_88, %c0_89] : memref<2x32x32xf32, #tpu.memory_space<vmem>>, vector<1x32x32xf32>
    %169 = vector.shape_cast %168 : vector<1x32x32xf32> to vector<32x32xf32>
    %cst_90 = arith.constant dense<0.000000e+00> : vector<32x32xf32>
    %170 = tpu.matmul %167, %169, %cst_90 {dimension_numbers = #tpu.dot_dimension_numbers<[1], [0], [0], [1], [0, 0, 1, 1], [], []>} : vector<32x32xf32>, vector<32x32xf32>, vector<32x32xf32> -> vector<32x32xf32>
    %171 = arith.addf %115, %170 : vector<32x32xf32>
    %c1_91 = arith.constant 1 : index
    %c0_92 = arith.constant 0 : index
    %c0_93 = arith.constant 0 : index
    %172 = vector.load %arg8[%c1_91, %c0_92, %c0_93] : memref<2x1x32xf32, #tpu.memory_space<vmem>>, vector<1x1x32xf32>
    %173 = vector.shape_cast %172 : vector<1x1x32xf32> to vector<1x32xf32>
    %174 = vector.broadcast %173 : vector<1x32xf32> to vector<32x32xf32>
    %175 = arith.addf %171, %174 : vector<32x32xf32>
    %c1_94 = arith.constant 1 : index
    %c0_95 = arith.constant 0 : index
    %c0_96 = arith.constant 0 : index
    %176 = vector.load %arg9[%c1_94, %c0_95, %c0_96] : memref<2x1x32xf32, #tpu.memory_space<vmem>>, vector<1x1x32xf32>
    %177 = vector.shape_cast %176 : vector<1x1x32xf32> to vector<1x32xf32>
    %c1_97 = arith.constant 1 : index
    %c0_98 = arith.constant 0 : index
    %c0_99 = arith.constant 0 : index
    %178 = vector.load %arg10[%c1_97, %c0_98, %c0_99] : memref<2x1x32xf32, #tpu.memory_space<vmem>>, vector<1x1x32xf32>
    %179 = vector.shape_cast %178 : vector<1x1x32xf32> to vector<1x32xf32>
    %cst_100 = arith.constant dense<0.000000e+00> : vector<32xf32>
    %180 = vector.multi_reduction <add>, %175, %cst_100 [1] : vector<32x32xf32> to vector<32xf32>
    %181 = vector.shape_cast %180 : vector<32xf32> to vector<32x1xf32>
    %cst_101 = arith.constant 3.200000e+01 : f32
    %182 = vector.broadcast %cst_101 : f32 to vector<32x1xf32>
    %183 = arith.divf %181, %182 : vector<32x1xf32>
    %184 = vector.broadcast %183 : vector<32x1xf32> to vector<32x32xf32>
    %185 = arith.subf %175, %184 : vector<32x32xf32>
    %186 = arith.mulf %185, %185 : vector<32x32xf32>
    %cst_102 = arith.constant dense<0.000000e+00> : vector<32xf32>
    %187 = vector.multi_reduction <add>, %186, %cst_102 [1] : vector<32x32xf32> to vector<32xf32>
    %188 = vector.shape_cast %187 : vector<32xf32> to vector<32x1xf32>
    %cst_103 = arith.constant 3.200000e+01 : f32
    %189 = vector.broadcast %cst_103 : f32 to vector<32x1xf32>
    %190 = arith.divf %188, %189 : vector<32x1xf32>
    %191 = vector.broadcast %183 : vector<32x1xf32> to vector<32x32xf32>
    %192 = arith.subf %175, %191 : vector<32x32xf32>
    %cst_104 = arith.constant 9.99999974E-6 : f32
    %193 = vector.broadcast %cst_104 : f32 to vector<32x1xf32>
    %194 = arith.addf %190, %193 : vector<32x1xf32>
    %195 = math.rsqrt %194 : vector<32x1xf32>
    %196 = vector.broadcast %195 : vector<32x1xf32> to vector<32x32xf32>
    %197 = arith.mulf %192, %196 : vector<32x32xf32>
    %198 = vector.broadcast %177 : vector<1x32xf32> to vector<32x32xf32>
    %199 = arith.mulf %197, %198 : vector<32x32xf32>
    %200 = vector.broadcast %179 : vector<1x32xf32> to vector<32x32xf32>
    %201 = arith.addf %199, %200 : vector<32x32xf32>
    %c1_105 = arith.constant 1 : index
    %c0_106 = arith.constant 0 : index
    %c0_107 = arith.constant 0 : index
    %202 = vector.load %arg11[%c1_105, %c0_106, %c0_107] : memref<2x32x128xf32, #tpu.memory_space<vmem>>, vector<1x32x128xf32>
    %203 = vector.shape_cast %202 : vector<1x32x128xf32> to vector<32x128xf32>
    %cst_108 = arith.constant dense<0.000000e+00> : vector<32x128xf32>
    %204 = tpu.matmul %201, %203, %cst_108 {dimension_numbers = #tpu.dot_dimension_numbers<[1], [0], [0], [1], [0, 0, 1, 1], [], []>} : vector<32x32xf32>, vector<32x128xf32>, vector<32x128xf32> -> vector<32x128xf32>
    %c1_109 = arith.constant 1 : index
    %c0_110 = arith.constant 0 : index
    %c0_111 = arith.constant 0 : index
    %205 = vector.load %arg12[%c1_109, %c0_110, %c0_111] : memref<2x1x128xf32, #tpu.memory_space<vmem>>, vector<1x1x128xf32>
    %206 = vector.shape_cast %205 : vector<1x1x128xf32> to vector<1x128xf32>
    %207 = vector.broadcast %206 : vector<1x128xf32> to vector<32x128xf32>
    %208 = arith.addf %204, %207 : vector<32x128xf32>
    %cst_112 = arith.constant 5.000000e-01 : f32
    %209 = vector.broadcast %cst_112 : f32 to vector<32x128xf32>
    %210 = arith.mulf %209, %208 : vector<32x128xf32>
    %cst_113 = arith.constant 4.471500e-02 : f32
    %211 = vector.broadcast %cst_113 : f32 to vector<32x128xf32>
    %212 = arith.mulf %211, %208 : vector<32x128xf32>
    %213 = arith.mulf %212, %208 : vector<32x128xf32>
    %214 = arith.mulf %213, %208 : vector<32x128xf32>
    %215 = arith.addf %208, %214 : vector<32x128xf32>
    %cst_114 = arith.constant 0.797884583 : f32
    %216 = vector.broadcast %cst_114 : f32 to vector<32x128xf32>
    %217 = arith.mulf %216, %215 : vector<32x128xf32>
    %218 = math.tanh %217 : vector<32x128xf32>
    %cst_115 = arith.constant 1.000000e+00 : f32
    %219 = vector.broadcast %cst_115 : f32 to vector<32x128xf32>
    %220 = arith.addf %219, %218 : vector<32x128xf32>
    %221 = arith.mulf %210, %220 : vector<32x128xf32>
    %c1_116 = arith.constant 1 : index
    %c0_117 = arith.constant 0 : index
    %c0_118 = arith.constant 0 : index
    %222 = vector.load %arg13[%c1_116, %c0_117, %c0_118] : memref<2x128x32xf32, #tpu.memory_space<vmem>>, vector<1x128x32xf32>
    %223 = vector.shape_cast %222 : vector<1x128x32xf32> to vector<128x32xf32>
    %cst_119 = arith.constant dense<0.000000e+00> : vector<32x32xf32>
    %224 = tpu.matmul %221, %223, %cst_119 {dimension_numbers = #tpu.dot_dimension_numbers<[1], [0], [0], [1], [0, 0, 1, 1], [], []>} : vector<32x128xf32>, vector<128x32xf32>, vector<32x32xf32> -> vector<32x32xf32>
    %225 = arith.addf %175, %224 : vector<32x32xf32>
    %c1_120 = arith.constant 1 : index
    %c0_121 = arith.constant 0 : index
    %c0_122 = arith.constant 0 : index
    %226 = vector.load %arg14[%c1_120, %c0_121, %c0_122] : memref<2x1x32xf32, #tpu.memory_space<vmem>>, vector<1x1x32xf32>
    %227 = vector.shape_cast %226 : vector<1x1x32xf32> to vector<1x32xf32>
    %228 = vector.broadcast %227 : vector<1x32xf32> to vector<32x32xf32>
    %229 = arith.addf %225, %228 : vector<32x32xf32>
    %c0_123 = arith.constant 0 : index
    %c0_124 = arith.constant 0 : index
    %230 = vector.load %arg15[%c0_123, %c0_124] : memref<1x32xf32, #tpu.memory_space<vmem>>, vector<1x32xf32>
    %c0_125 = arith.constant 0 : index
    %c0_126 = arith.constant 0 : index
    %231 = vector.load %arg16[%c0_125, %c0_126] : memref<1x32xf32, #tpu.memory_space<vmem>>, vector<1x32xf32>
    %cst_127 = arith.constant dense<0.000000e+00> : vector<32xf32>
    %232 = vector.multi_reduction <add>, %229, %cst_127 [1] : vector<32x32xf32> to vector<32xf32>
    %233 = vector.shape_cast %232 : vector<32xf32> to vector<32x1xf32>
    %cst_128 = arith.constant 3.200000e+01 : f32
    %234 = vector.broadcast %cst_128 : f32 to vector<32x1xf32>
    %235 = arith.divf %233, %234 : vector<32x1xf32>
    %236 = vector.broadcast %235 : vector<32x1xf32> to vector<32x32xf32>
    %237 = arith.subf %229, %236 : vector<32x32xf32>
    %238 = arith.mulf %237, %237 : vector<32x32xf32>
    %cst_129 = arith.constant dense<0.000000e+00> : vector<32xf32>
    %239 = vector.multi_reduction <add>, %238, %cst_129 [1] : vector<32x32xf32> to vector<32xf32>
    %240 = vector.shape_cast %239 : vector<32xf32> to vector<32x1xf32>
    %cst_130 = arith.constant 3.200000e+01 : f32
    %241 = vector.broadcast %cst_130 : f32 to vector<32x1xf32>
    %242 = arith.divf %240, %241 : vector<32x1xf32>
    %243 = vector.broadcast %235 : vector<32x1xf32> to vector<32x32xf32>
    %244 = arith.subf %229, %243 : vector<32x32xf32>
    %cst_131 = arith.constant 9.99999974E-6 : f32
    %245 = vector.broadcast %cst_131 : f32 to vector<32x1xf32>
    %246 = arith.addf %242, %245 : vector<32x1xf32>
    %247 = math.rsqrt %246 : vector<32x1xf32>
    %248 = vector.broadcast %247 : vector<32x1xf32> to vector<32x32xf32>
    %249 = arith.mulf %244, %248 : vector<32x32xf32>
    %250 = vector.broadcast %230 : vector<1x32xf32> to vector<32x32xf32>
    %251 = arith.mulf %249, %250 : vector<32x32xf32>
    %252 = vector.broadcast %231 : vector<1x32xf32> to vector<32x32xf32>
    %253 = arith.addf %251, %252 : vector<32x32xf32>
    %c0_132 = arith.constant 0 : index
    %c0_133 = arith.constant 0 : index
    %254 = vector.load %arg17[%c0_132, %c0_133] : memref<32x32xf32, #tpu.memory_space<vmem>>, vector<32x32xf32>
    tpu.vector_store %arg17[%c0_132, %c0_133], %253 {strides = array<i32>} : memref<32x32xf32, #tpu.memory_space<vmem>>, vector<32x32xf32>,
    return
  }
}

</mosaic_0001>

<bundles_post_ra>
// kernel: tpu_custom_call.1
= control target key start
LH: loop header
LB: loop body
LE: loop exit
PB: predicated region body
PF: predicated region fallthrough
CT: control target
= control target key end

     0   :  { %s3469_s0 = inlined_call_operand.vmem [shape: f32[32,32], index: 0, kind: input, shape index: {}]   ;;  %s3470_s1 = inlined_call_operand.vmem [shape: f32[2,32,128], index: 1, kind: input, shape index: {}]   ;;  %s3471_s2 = inlined_call_operand.vmem [shape: f32[128,32], index: 2, kind: input, shape index: {}]   ;;  %s3472_s3 = inlined_call_operand.vmem [shape: f32[2,1,32], index: 3, kind: input, shape index: {}]   ;;  %s3473_s4 = inlined_call_operand.vmem [shape: f32[2,1,32], index: 4, kind: input, shape index: {}]   ;;  %s3474_s5 = inlined_call_operand.vmem [shape: f32[2,32,96], index: 5, kind: input, shape index: {}]   ;;  %s3475_s6 = inlined_call_operand.vmem [shape: f32[2,1,96], index: 6, kind: input, shape index: {}]   ;;  %s3476_s7 = inlined_call_operand.vmem [shape: f32[2,32,32], index: 7, kind: input, shape index: {}]   ;;  %s3477_s8 = inlined_call_operand.vmem [shape: f32[2,1,32], index: 8, kind: input, shape index: {}]   ;;  %s3478_s9 = inlined_call_operand.vmem [shape: f32[2,1,32], index: 9, kind: input, shape index: {}]   ;;  %s3479_s10 = inlined_call_operand.vmem [shape: f32[2,1,32], index: 10, kind: input, shape index: {}]   ;;  %s3480_s11 = inlined_call_operand.vmem [shape: f32[2,32,128], index: 11, kind: input, shape index: {}]   ;;  %s3481_s12 = inlined_call_operand.vmem [shape: f32[2,1,128], index: 12, kind: input, shape index: {}]   ;;  %s3482_s13 = inlined_call_operand.vmem [shape: f32[2,128,32], index: 13, kind: input, shape index: {}]   ;;  %s3483_s14 = inlined_call_operand.vmem [shape: f32[2,1,32], index: 14, kind: input, shape index: {}]   ;;  %s3484_s15 = inlined_call_operand.vmem [shape: f32[1,32], index: 15, kind: input, shape index: {}]   ;;  %s3485_s16 = inlined_call_operand.vmem [shape: f32[1,32], index: 16, kind: input, shape index: {}]   ;;  %s3486_s17 = inlined_call_operand.hbm [shape: f32[32,32], index: 17, kind: output, shape index: {}]  }
   0x1   :  { %3489 = sst [smem:[#allocation5_spill]] %s3469_s0 }
   0x2   :  { %3490 = sst [smem:[#allocation6_spill]] %s3470_s1 }
   0x3   :  { %s3491_s26 = sld [smem:[#allocation5_spill]]  ;;  %vm79_vm0 = vcmask 261120  }
   0x9   :  { %v59_v0 = vld [vmem:[%s3491_s26 + $0x10] sm:$0xff]  ;;  %v57_v1 = vld [vmem:[%s3491_s26] sm:$0xff]  ;;  %v60_v2 = vld [vmem:[%s3491_s26 + $0x18] sm:$0xff] }
   0xa   :  { %v86_v3 = vsel %vm79_vm0, %v59_v0, 0.0  ;;  %v80_v4 = vsel %vm79_vm0, %v57_v1, 0.0  ;;  %v58_v5 = vld [vmem:[%s3491_s26 + $0x8] sm:$0xff]  ;;  %v89_v6 = vsel %vm79_vm0, %v60_v2, 0.0 }
   0xb   :  { %87 = vadd.xlane.f32.xlu1 %v86_v3  ;;  %81 = vadd.xlane.f32.xlu0 %v80_v4  ;;  %v83_v7 = vsel %vm79_vm0, %v58_v5, 0.0 }
   0xc   :  { %22 = vsyncpa [#allocation3], 0  ;;  %v2311_v8 = vmov 32.0   ;;  %v2453_v35 = vld [vmem:[%s3471_s2 + $0x68] sm:$0xff]  ;;  %s2312_s20 = smov 32   ;;  %v192_v36 = vld [vmem:[%s3474_s5 + $0x18] sm:$0xff] }
   0xd   :  { %2175 = vrcp.f32 %v2311_v8  ;;  %221 = vmatpush.msra.mxu0 %v192_v36  ;;  %v191_v37 = vld [vmem:[%s3474_s5 + $0x10] sm:$0xff]  ;;  %v190_v38 = vld [vmem:[%s3474_s5 + $0x8] sm:$0xff]  ;;  %v189_v41 = vld [vmem:[%s3474_s5] sm:$0xff]  ;;  %s2313_s24 = smov 96   ;;  %s3494_s0 = sld [smem:[#allocation6_spill]] }
   0xe   :  { %v2469_v39 = vld [vmem:[%s3471_s2 + $0x48] sm:$0xff]  ;;  %v2474_v40 = vld [vmem:[%s3471_s2 + $0x70] sm:$0xff]  ;;  %v2493_v47 = vld [vmem:[%s3471_s2 + $0x58] sm:$0xff]  ;;  %s1954_s23 = sshll.u32 %s3486_s17, 4  ;;  %s1955_s23 = int_to_ptr.hbm [resolvable:$true] %s1954_s23 }
   0xf   :  { %222 = vmatpush.msra.mxu0 %v191_v37  ;;  %v2486_v44 = vld [vmem:[%s3471_s2 + $0x30] sm:$0xff]  ;;  %v2502_v52 = vld [vmem:[%s3471_s2 + $0x20] sm:$0xff] }
  0x10   :  { %v2509_v55 = vld [vmem:[%s3471_s2 + $0x40] sm:$0xff] }
  0x11   :  { %223 = vmatpush.msra.mxu0 %v190_v38 }
  0x13   :  { %90 = vadd.xlane.f32.xlu1 %v89_v6  ;;  %84 = vadd.xlane.f32.xlu0 %v83_v7  ;;  %v2176_v9 = vpop.eup %2175 }
  0x14   :  { %v93_v10 = vmul.f32 32.0, %v2176_v9  ;;  %vm97_vm1 = vweird.f32 %v2176_v9  ;;  %224 = vmatpush.msra.mxu0 %v189_v41  ;;  %v2587_v41 = vld [vmem:[%s3471_s2 + $0x38] sm:$0xff] }
  0x16   :  { %v94_v11 = vsub.f32 1.0, %v93_v10 }
  0x18   :  { %v95_v12 = vmul.f32 %v2176_v9, %v94_v11  ;;  %v2539_v11 = vld [vmem:[%s3471_s2 + $0x78] sm:$0xff] }
  0x19   :  { %620 = vmatpush.msra.mxu3 %v2539_v11 }
  0x1a   :  { %v96_v13 = vadd.f32 %v2176_v9, %v95_v12 }
  0x1b   :  { %621 = vmatpush.msra.mxu3 %v2474_v40 }
  0x1c   :  { %v2424_v14 = vsel %vm97_vm1, %v2176_v9, %v96_v13  ;;  %v2157_v9 = vld [vmem:[%s3472_s3] ss:$0 sm:$0xff] }
  0x1d   :  { %622 = vmatpush.msra.mxu3 %v2453_v35 }
  0x7e   :  { %v88_v15 = vpop.xlane.xlu1 %87  ;;  %v82_v16 = vpop.xlane.xlu0 %81 }
  0x7f   :  { %v101_v17 = vmul.f32 %v2424_v14, %v88_v15  ;;  %v99_v18 = vmul.f32 %v2424_v14, %v82_v16  ;;  %v2158_v15 = vld [vmem:[%s3473_s4] ss:$0 sm:$0xff] }
  0x81   :  { %v2428_v19 = vsub.f32 %v59_v0, %v101_v17  ;;  %v2430_v20 = vsub.f32 %v57_v1, %v99_v18  ;;  %v2525_v1 = vld [vmem:[%s3471_s2 + $0x28] sm:$0xff] }
  0x83   :  { %v109_v21 = vmul.f32 %v2428_v19, %v2428_v19  ;;  %v107_v22 = vmul.f32 %v2430_v20, %v2430_v20 }
  0x85   :  { %v117_v23 = vsel %vm79_vm0, %v109_v21, 0.0  ;;  %v111_v24 = vsel %vm79_vm0, %v107_v22, 0.0 }
  0x86   :  { %v91_v25 = vpop.xlane.xlu1 %90  ;;  %118 = vadd.xlane.f32.xlu0 %v117_v23  ;;  %112 = vadd.xlane.f32.xlu2 %v111_v24  ;;  %v85_v26 = vpop.xlane.xlu0 %84  ;;  %v2555_v23 = vld [vmem:[%s3471_s2 + $0x60] sm:$0xff] }
  0x87   :  { %v102_v27 = vmul.f32 %v2424_v14, %v91_v25  ;;  %v100_v28 = vmul.f32 %v2424_v14, %v85_v26  ;;  %623 = vmatpush.msra.mxu3 %v2555_v23 }
  0x89   :  { %v2440_v29 = vsub.f32 %v60_v2, %v102_v27  ;;  %v2442_v30 = vsub.f32 %v58_v5, %v100_v28  ;;  %624 = vmatpush.msra.mxu3 %v2493_v47 }
  0x8b   :  { %v110_v31 = vmul.f32 %v2440_v29, %v2440_v29  ;;  %v108_v32 = vmul.f32 %v2442_v30, %v2442_v30 }
  0x8d   :  { %v120_v33 = vsel %vm79_vm0, %v110_v31, 0.0  ;;  %v114_v34 = vsel %vm79_vm0, %v108_v32, 0.0  ;;  %v2571_v32 = vld [vmem:[%s3471_s2 + $0x50] sm:$0xff] }
  0x8e   :  { %121 = vadd.xlane.f32.xlu1 %v120_v33  ;;  %115 = vadd.xlane.f32.xlu2 %v114_v34 }
  0x8f   :  { %625 = vmatpush.msra.mxu3 %v2571_v32 }
  0x91   :  { %626 = vmatpush.msra.mxu3 %v2469_v39 }
  0x93   :  { %627 = vmatpush.msra.mxu3 %v2509_v55 }
  0x95   :  { %628 = vmatpush.msra.mxu3 %v2587_v41 }
  0x97   :  { %629 = vmatpush.msra.mxu3 %v2486_v44 }
  0x99   :  { %630 = vmatpush.msra.mxu3 %v2525_v1 }
  0x9a   :  { %282 = vrot.lane.b32.xlu0 %v2474_v40, %s2312_s20 }
  0x9b   :  { %631 = vmatpush.msra.mxu3 %v2502_v52 }
  0xa2   :  { %276 = vrot.lane.b32.xlu0 %v2493_v47, %s2312_s20 }
  0xa6   :  { %284 = vrot.lane.b32.xlu2 %v2539_v11, %s2312_s20 }
  0xa7   :  { %280 = vrot.lane.b32.xlu1 %v2453_v35, %s2312_s20 }
  0xaa   :  { %270 = vrot.lane.b32.xlu0 %v2509_v55, %s2312_s20 }
  0xae   :  { %278 = vrot.lane.b32.xlu2 %v2555_v23, %s2312_s20 }
  0xaf   :  { %272 = vrot.lane.b32.xlu1 %v2469_v39, %s2312_s20 }
  0xb2   :  { %264 = vrot.lane.b32.xlu0 %v2525_v1, %s2312_s20 }
  0xb6   :  { %274 = vrot.lane.b32.xlu2 %v2571_v32, %s2312_s20 }
  0xb7   :  { %266 = vrot.lane.b32.xlu1 %v2486_v44, %s2312_s20 }
  0xbe   :  { %268 = vrot.lane.b32.xlu2 %v2587_v41, %s2312_s20 }
  0xbf   :  { %262 = vrot.lane.b32.xlu1 %v2502_v52, %s2312_s20 }
  0xf9   :  { %v113_v42 = vpop.xlane.xlu2 %112  ;;  %v119_v43 = vpop.xlane.xlu0 %118 }
  0xfa   :  { %v123_v45 = vmul.f32 %v113_v42, %v2424_v14  ;;  %v125_v46 = vmul.f32 %v119_v43, %v2424_v14 }
  0xfc   :  { %v127_v48 = vadd.f32 1e-05, %v123_v45  ;;  %v129_v49 = vadd.f32 1e-05, %v125_v46 }
  0xfe   :  { %2177 = vrsqrt.f32 %v127_v48  ;;  %vm137_vm3 = vweird.f32 %v127_v48  ;;  %vm157_vm5 = vweird.f32 %v129_v49 }
  0xff   :  { %2179 = vrsqrt.f32 %v129_v49 }
 0x101   :  { %v122_v50 = vpop.xlane.xlu1 %121  ;;  %v116_v51 = vpop.xlane.xlu2 %115 }
 0x102   :  { %v126_v53 = vmul.f32 %v122_v50, %v2424_v14  ;;  %v124_v54 = vmul.f32 %v116_v51, %v2424_v14  ;;  %v2616_v51 = vld [vmem:[%s3471_s2 + $0x8] sm:$0xff] }
 0x104   :  { %v2178_v56 = vpop.eup %2177  ;;  %v2511_v57 = vadd.f32 1e-05, %v126_v53  ;;  %v128_v58 = vadd.f32 1e-05, %v124_v54  ;;  %v2159_v54 = vld [vmem:[%s3475_s6] ss:$0 sm:$0xff] }
 0x105   :  { %v2515_v59 = vpop.eup %2179  ;;  %v132_v60 = vmul.f32 %v2178_v56, %v127_v48  ;;  %vm138_vm2 = vweird.f32 %v2178_v56 }
 0x106   :  { %v152_v61 = vmul.f32 %v2515_v59, %v129_v49  ;;  %2181 = vrsqrt.f32 %v2511_v57  ;;  %vm139_vm4 = vmor %vm137_vm3, %vm138_vm2  ;;  %vm158_vm6 = vweird.f32 %v2515_v59  ;;  %vm147_vm9 = vweird.f32 %v128_v58  ;;  %v2604_v49 = vld [vmem:[%s3471_s2 + $0x18] sm:$0xff] }
 0x107   :  { %v133_v62 = vmul.f32 %v2178_v56, %v132_v60  ;;  %2183 = vrsqrt.f32 %v128_v58  ;;  %vm2558_vm8 = vmor %vm157_vm5, %vm158_vm6  ;;  %vm167_vm11 = vweird.f32 %v2511_v57  ;;  %632 = vmatpush.msra.mxu3 %v2604_v49 }
 0x108   :  { %v153_v0 = vmul.f32 %v2515_v59, %v152_v61  ;;  %v2636_v61 = vld [vmem:[%s3471_s2] sm:$0xff] }
 0x109   :  { %v134_v63 = vmul.f32 0.5, %v133_v62  ;;  %v2619_v53 = vpop.permute.xlu2 %284 }
 0x10a   :  { %v154_v6 = vmul.f32 0.5, %v153_v0 }
 0x10b   :  { %v135_v2 = vsub.f32 1.5, %v134_v63 }
 0x10c   :  { %v2527_v3 = vpop.eup %2181  ;;  %v155_v16 = vsub.f32 1.5, %v154_v6  ;;  %v2641_v0 = vpop.permute.xlu0 %282 }
 0x10d   :  { %v2184_v4 = vpop.eup %2183  ;;  %v136_v5 = vmul.f32 %v2178_v56, %v135_v2  ;;  %v162_v7 = vmul.f32 %v2527_v3, %v2511_v57  ;;  %vm168_vm12 = vweird.f32 %v2527_v3 }
 0x10e   :  { %v142_v8 = vmul.f32 %v2184_v4, %v128_v58  ;;  %vm148_vm7 = vweird.f32 %v2184_v4  ;;  %v156_v24 = vmul.f32 %v2515_v59, %v155_v16  ;;  %vm169_vm13 = vmor %vm167_vm11, %vm168_vm12 }
 0x10f   :  { %v140_v10 = vsel %vm139_vm4, %v2178_v56, %v136_v5  ;;  %v163_v17 = vmul.f32 %v2527_v3, %v162_v7  ;;  %vm149_vm10 = vmor %vm147_vm9, %vm148_vm7 }
 0x110   :  { %v143_v12 = vmul.f32 %v2184_v4, %v142_v8  ;;  %v171_v13 = vmul.f32 %v140_v10, %v2430_v20  ;;  %v160_v33 = vsel %vm2558_vm8, %v2515_v59, %v156_v24 }
 0x111   :  { %v164_v26 = vmul.f32 0.5, %v163_v17  ;;  %v173_v37 = vmul.f32 %v160_v33, %v2428_v19  ;;  %v2631_v60 = vpop.permute.xlu2 %278 }
 0x112   :  { %v144_v18 = vmul.f32 0.5, %v143_v12  ;;  %v178_v21 = vmul.f32 %v2157_v9, %v171_v13 }
 0x113   :  { %v165_v34 = vsub.f32 1.5, %v164_v26  ;;  %v180_v42 = vmul.f32 %v2157_v9, %v173_v37 }
 0x114   :  { %v145_v20 = vsub.f32 1.5, %v144_v18  ;;  %v185_v22 = vadd.f32 %v2158_v15, %v178_v21  ;;  %v2666_v12 = vpop.permute.xlu0 %276 }
 0x115   :  { %v166_v38 = vmul.f32 %v2527_v3, %v165_v34  ;;  %v187_v43 = vadd.f32 %v2158_v15, %v180_v42 }
 0x116   :  { %v146_v27 = vmul.f32 %v2184_v4, %v145_v20  ;;  %1966 = vmatmul.msk.f32.vlgmr.msra.gmra.mxu0 %vm79_vm0, %v185_v22 }
 0x117   :  { %v170_v19 = vsel %vm169_vm13, %v2527_v3, %v166_v38 }
 0x118   :  { %v150_v28 = vsel %vm149_vm10, %v2184_v4, %v146_v27  ;;  %v174_v45 = vmul.f32 %v170_v19, %v2440_v29  ;;  %v2610_v29 = vld [vmem:[%s3471_s2 + $0x10] sm:$0xff] }
 0x119   :  { %v172_v31 = vmul.f32 %v150_v28, %v2442_v30  ;;  %633 = vmatpush.msra.mxu3 %v2610_v29  ;;  %v2626_v58 = vpop.permute.xlu1 %280  ;;  %v2650_v4 = vpop.permute.xlu2 %274 }
 0x11a   :  { %v181_v46 = vmul.f32 %v2157_v9, %v174_v45 }
 0x11b   :  { %v179_v36 = vmul.f32 %v2157_v9, %v172_v31  ;;  %634 = vmatpush.msra.mxu3 %v2616_v51 }
 0x11c   :  { %v188_v48 = vadd.f32 %v2158_v15, %v181_v46  ;;  %v2693_v24 = vpop.permute.xlu0 %270 }
 0x11d   :  { %v186_v30 = vadd.f32 %v2158_v15, %v179_v36  ;;  %635 = vmatpush.msra.mxu3 %v2636_v61 }
 0x11f   :  { %1967 = vmatmul.msk.f32.gmra.mxu0 %vm79_vm0, %v186_v30 }
 0x121   :  { %v2645_v3 = vpop.permute.xlu1 %272  ;;  %v2664_v10 = vpop.permute.xlu2 %268 }
 0x124   :  { %v2699_v26 = vpop.permute.xlu0 %264 }
 0x127   :  { %1968 = vmatmul.msk.f32.gmra.mxu0 %vm79_vm0, %v187_v43 }
 0x129   :  { %v2660_v9 = vpop.permute.xlu1 %266 }
 0x12f   :  { %1969 = vmatmul.msk.f32.gmra.mxu0 %vm79_vm0, %v188_v48 }
 0x131   :  { %v2678_v17 = vpop.permute.xlu1 %262 }
 0x193   :  { %v226_v50 = vpop.f32.mrf.mxu0 }
 0x194   :  { %v2676_v16 = vadd.f32 %v2159_v54, %v226_v50 }
 0x196   :  { %v306_v18 = vmul.f32 %v2678_v17, %v2676_v16  ;;  %v314_v21 = vmul.f32 %v2631_v60, %v2676_v16  ;;  %v310_v25 = vmul.f32 %v2693_v24, %v2676_v16 }
 0x19c   :  { %v229_v56 = vpop.f32.mrf.mxu0 }
 0x19d   :  { %v2624_v57 = vadd.f32 %v2159_v54, %v229_v56 }
 0x19f   :  { %v315_v59 = vmul.f32 %v2626_v58, %v2624_v57  ;;  %v311_v20 = vmul.f32 %v2645_v3, %v2624_v57  ;;  %v307_v27 = vmul.f32 %v2699_v26, %v2624_v57 }
 0x1a1   :  { %428 = vrot.lane.b32.xlu1 %v315_v59, %s2313_s24 }
 0x1a4   :  { %v232_v62 = vpop.f32.mrf.mxu0 }
 0x1a5   :  { %v2639_v63 = vadd.f32 %v2159_v54, %v232_v62 }
 0x1a7   :  { %v316_v2 = vmul.f32 %v2641_v0, %v2639_v63  ;;  %v312_v7 = vmul.f32 %v2650_v4, %v2639_v63  ;;  %v308_v22 = vmul.f32 %v2660_v9, %v2639_v63 }
 0x1a9   :  { %256 = vrot.lane.b32.xlu1 %v2616_v51, %s2312_s20  ;;  %430 = vrot.lane.b32.xlu0 %v316_v2, %s2313_s24 }
 0x1ac   :  { %v235_v5 = vpop.f32.mrf.mxu0 }
 0x1ad   :  { %v2652_v6 = vadd.f32 %v2159_v54, %v235_v5 }
 0x1af   :  { %v317_v8 = vmul.f32 %v2619_v53, %v2652_v6  ;;  %v309_v13 = vmul.f32 %v2664_v10, %v2652_v6  ;;  %v313_v15 = vmul.f32 %v2666_v12, %v2652_v6 }
 0x1b1   :  { %432 = vrot.lane.b32.xlu2 %v317_v8, %s2313_s24  ;;  %422 = vrot.lane.b32.xlu1 %v312_v7, %s2313_s24 }
 0x1b2   :  { %258 = vrot.lane.b32.xlu0 %v2610_v29, %s2312_s20 }
 0x1b9   :  { %260 = vrot.lane.b32.xlu2 %v2604_v49, %s2312_s20  ;;  %416 = vrot.lane.b32.xlu1 %v309_v13, %s2313_s24 }
 0x1ba   :  { %424 = vrot.lane.b32.xlu0 %v313_v15, %s2313_s24 }
 0x1c1   :  { %426 = vrot.lane.b32.xlu2 %v314_v21, %s2313_s24  ;;  %410 = vrot.lane.b32.xlu1 %v306_v18, %s2313_s24 }
 0x1c2   :  { %420 = vrot.lane.b32.xlu0 %v311_v20, %s2313_s24 }
 0x1c9   :  { %254 = vrot.lane.b32.xlu2 %v2636_v61, %s2312_s20  ;;  %s2314_s20 = smov 64  }
 0x1ca   :  { %414 = vrot.lane.b32.xlu0 %v308_v22, %s2313_s24 }
 0x1d1   :  { %418 = vrot.lane.b32.xlu2 %v310_v25, %s2313_s24 }
 0x1d9   :  { %412 = vrot.lane.b32.xlu2 %v307_v27, %s2313_s24 }
 0x20b   :  { %v433_v28 = vpop.permute.xlu2 %432 }
 0x20c   :  { %1970 = vmatpush.xpose.msk.msra.mxu1 %vm79_vm0, %v433_v28 }
 0x213   :  { %v429_v31 = vpop.permute.xlu1 %428  ;;  %v2705_v33 = vpop.permute.xlu2 %260 }
 0x214   :  { %v305_v34 = vmul.f32 %v2705_v33, %v2652_v6 }
 0x216   :  { %408 = vrot.lane.b32.xlu0 %v305_v34, %s2313_s24 }
 0x21b   :  { %v2710_v36 = vpop.permute.xlu1 %256  ;;  %v427_v30 = vpop.permute.xlu2 %426 }
 0x21c   :  { %v303_v37 = vmul.f32 %v2710_v36, %v2624_v57  ;;  %v431_v38 = vpop.permute.xlu0 %430 }
 0x21d   :  { %1971 = vmatpush.xpose.msk.msra.mxu1 %vm79_vm0, %v431_v38  ;;  %v382_v38 = vld [vmem:[%s3494_s0] sm:$0xff] }
 0x21e   :  { %404 = vrot.lane.b32.xlu1 %v303_v37, %s2313_s24 }
 0x221   :  { %1972 = vmatpush.xpose.msk.msra.mxu1 %vm79_vm0, %v429_v31 }
 0x223   :  { %v2717_v42 = vpop.permute.xlu2 %254  ;;  %v423_v48 = vpop.permute.xlu1 %422 }
 0x224   :  { %v302_v19 = vmul.f32 %v2717_v42, %v2676_v16  ;;  %v2721_v43 = vpop.permute.xlu0 %258 }
 0x225   :  { %v304_v45 = vmul.f32 %v2721_v43, %v2639_v63  ;;  %1973 = vmatpush.xpose.msk.msra.mxu1 %vm79_vm0, %v427_v30 }
 0x226   :  { %346 = vrot.lane.b32.xlu1 %v2474_v40, %s2314_s20  ;;  %402 = vrot.lane.b32.xlu0 %v302_v19, %s2313_s24 }
 0x227   :  { %406 = vrot.lane.b32.xlu2 %v304_v45, %s2313_s24 }
 0x22c   :  { %v425_v46 = vpop.permute.xlu0 %424 }
 0x22d   :  { %1974 = vmatpush.xpose.msk.msra.mxu1 %vm79_vm0, %v425_v46 }
 0x22e   :  { %340 = vrot.lane.b32.xlu1 %v2493_v47, %s2314_s20  ;;  %344 = vrot.lane.b32.xlu0 %v2453_v35, %s2314_s20  ;;  %v419_v47 = vpop.permute.xlu2 %418  ;;  %v417_v35 = vpop.permute.xlu1 %416 }
 0x22f   :  { %348 = vrot.lane.b32.xlu2 %v2539_v11, %s2314_s20 }
 0x231   :  { %1975 = vmatpush.xpose.msk.msra.mxu1 %vm79_vm0, %v423_v48  ;;  %v383_v48 = vld [vmem:[%s3494_s0 + $0x8] sm:$0xff] }
 0x234   :  { %v421_v40 = vpop.permute.xlu0 %420 }
 0x235   :  { %1976 = vmatpush.xpose.msk.msra.mxu1 %vm79_vm0, %v421_v40 }
 0x236   :  { %334 = vrot.lane.b32.xlu1 %v2509_v55, %s2314_s20  ;;  %338 = vrot.lane.b32.xlu0 %v2571_v32, %s2314_s20  ;;  %v413_v11 = vpop.permute.xlu2 %412 }
 0x237   :  { %342 = vrot.lane.b32.xlu2 %v2555_v23, %s2314_s20 }
 0x239   :  { %1977 = vmatpush.xpose.msk.msra.mxu1 %vm79_vm0, %v419_v47 }
 0x23c   :  { %v415_v55 = vpop.permute.xlu0 %414 }
 0x23d   :  { %1978 = vmatpush.xpose.msk.msra.mxu1 %vm79_vm0, %v417_v35 }
 0x23e   :  { %328 = vrot.lane.b32.xlu1 %v2525_v1, %s2314_s20  ;;  %332 = vrot.lane.b32.xlu0 %v2587_v41, %s2314_s20  ;;  %v411_v1 = vpop.permute.xlu1 %410 }
 0x23f   :  { %336 = vrot.lane.b32.xlu2 %v2469_v39, %s2314_s20 }
 0x241   :  { %1979 = vmatpush.xpose.msk.msra.mxu1 %vm79_vm0, %v415_v55 }
 0x245   :  { %1980 = vmatpush.xpose.msk.msra.mxu1 %vm79_vm0, %v413_v11 }
 0x246   :  { %322 = vrot.lane.b32.xlu1 %v2610_v29, %s2314_s20  ;;  %326 = vrot.lane.b32.xlu0 %v2502_v52, %s2314_s20 }
 0x247   :  { %330 = vrot.lane.b32.xlu2 %v2486_v44, %s2314_s20 }
 0x249   :  { %1981 = vmatpush.xpose.msk.msra.mxu1 %vm79_vm0, %v411_v1  ;;  %v384_v1 = vld [vmem:[%s3494_s0 + $0x10] sm:$0xff] }
 0x24e   :  { %320 = vrot.lane.b32.xlu0 %v2616_v51, %s2314_s20 }
 0x24f   :  { %324 = vrot.lane.b32.xlu2 %v2604_v49, %s2314_s20 }
 0x257   :  { %318 = vrot.lane.b32.xlu2 %v2636_v61, %s2314_s20 }
 0x281   :  { %v407_v39 = vpop.permute.xlu2 %406 }
 0x288   :  { %v409_v23 = vpop.permute.xlu0 %408 }
 0x289   :  { %1982 = vmatpush.xpose.msk.msra.mxu1 %vm79_vm0, %v409_v23  ;;  %v2771_v44 = vpop.permute.xlu2 %348 }
 0x28a   :  { %v381_v8 = vmul.f32 %v2771_v44, %v2652_v6 }
 0x28d   :  { %1983 = vmatpush.xpose.msk.msra.mxu1 %vm79_vm0, %v407_v39 }
 0x290   :  { %v405_v52 = vpop.permute.xlu1 %404 }
 0x291   :  { %1984 = vmatpush.xpose.msk.msra.mxu1 %vm79_vm0, %v405_v52  ;;  %v2776_v49 = vpop.permute.xlu2 %342 }
 0x292   :  { %v378_v51 = vmul.f32 %v2776_v49, %v2676_v16 }
 0x298   :  { %v2773_v32 = vpop.permute.xlu1 %346  ;;  %v403_v41 = vpop.permute.xlu0 %402 }
 0x299   :  { %1985 = vmatpush.xpose.msk.msra.mxu1 %vm79_vm0, %v403_v41  ;;  %v2791_v59 = vpop.permute.xlu2 %336  ;;  %v380_v7 = vmul.f32 %v2773_v32, %v2639_v63 }
 0x29a   :  { %v375_v62 = vmul.f32 %v2791_v59, %v2624_v57 }
 0x29b   :  { %v2087_v15 = vpack.i.bf16 %v380_v7, %v381_v8 }
 0x29c   :  { %1986 = vmatmul.msk.f32.vlgmr.msra.gmra.mxu1 %vm79_vm0, %v2676_v16 }
 0x2a0   :  { %v2780_v50 = vpop.permute.xlu1 %340  ;;  %v2782_v29 = vpop.permute.xlu0 %344 }
 0x2a1   :  { %v379_v54 = vmul.f32 %v2782_v29, %v2624_v57  ;;  %v377_v21 = vmul.f32 %v2780_v50, %v2652_v6  ;;  %v2818_v25 = vpop.permute.xlu2 %330 }
 0x2a2   :  { %v372_v28 = vmul.f32 %v2818_v25, %v2639_v63 }
 0x2a3   :  { %v2077_v56 = vpack.i.bf16 %v378_v51, %v379_v54 }
 0x2a4   :  { %1987 = vmatmul.msk.f32.gmra.mxu1 %vm79_vm0, %v2624_v57 }
 0x2a5   :  { %2078 = vrot.lane.b32.xlu2 %v2077_v56, %s2314_s20 }
 0x2a8   :  { %v2793_v61 = vpop.permute.xlu1 %334  ;;  %v2806_v13 = vpop.permute.xlu0 %338 }
 0x2a9   :  { %v374_v2 = vmul.f32 %v2793_v61, %v2676_v16  ;;  %v376_v18 = vmul.f32 %v2806_v13, %v2639_v63  ;;  %v2827_v30 = vpop.permute.xlu2 %324 }
 0x2ab   :  { %v2082_v5 = vpack.i.bf16 %v374_v2, %v375_v62  ;;  %v2092_v20 = vpack.i.bf16 %v376_v18, %v377_v21 }
 0x2ac   :  { %1988 = vmatmul.msk.f32.gmra.mxu1 %vm79_vm0, %v2639_v63 }
 0x2ad   :  { %2083 = vrot.lane.b32.xlu1 %v2082_v5, %s2314_s20 }
 0x2b0   :  { %v2815_v22 = vpop.permute.xlu0 %332  ;;  %v2825_v34 = vpop.permute.xlu1 %328 }
 0x2b1   :  { %v373_v27 = vmul.f32 %v2815_v22, %v2652_v6  ;;  %v2837_v40 = vpop.permute.xlu2 %318  ;;  %v371_v56 = vmul.f32 %v2825_v34, %v2624_v57 }
 0x2b3   :  { %v2097_v31 = vpack.i.bf16 %v372_v28, %v373_v27  ;;  %v369_v28 = vmul.f32 %v2827_v30, %v2652_v6 }
 0x2b4   :  { %1989 = vmatmul.msk.f32.gmra.mxu1 %vm79_vm0, %v2652_v6  ;;  %v385_v6 = vld [vmem:[%s3494_s0 + $0x18] sm:$0xff] }
 0x2b5   :  { %2088 = vrot.lane.b32.xlu1 %v2087_v15, %s2314_s20 }
 0x2b8   :  { %v2829_v37 = vpop.permute.xlu1 %322  ;;  %v2839_v55 = vpop.permute.xlu0 %326 }
 0x2b9   :  { %v370_v41 = vmul.f32 %v2839_v55, %v2676_v16  ;;  %v368_v21 = vmul.f32 %v2829_v37, %v2639_v63  ;;  %v366_v63 = vmul.f32 %v2837_v40, %v2676_v16 }
 0x2bb   :  { %v2102_v2 = vpack.i.bf16 %v370_v41, %v371_v56 }
 0x2bd   :  { %2093 = vrot.lane.b32.xlu1 %v2092_v20, %s2314_s20 }
 0x2c5   :  { %2098 = vrot.lane.b32.xlu1 %v2097_v31, %s2314_s20 }
 0x2ff   :  { %v2079_v23 = vpop.permute.xlu2 %2078 }
 0x300   :  { %v2080_v62 = vunpack.i.l.bf16 %v2079_v23  ;;  %v2081_v5 = vunpack.i.h.bf16 %v2079_v23 }
 0x319   :  { %v495_v19 = vpop.f32.mrf.mxu1 }
 0x31a   :  { %v496_v45 = vadd.f32 %v495_v19, %v382_v38  ;;  %v2107_v38 = vpack.i.bf16 %v368_v21, %v369_v28 }
 0x31c   :  { %507 = vmax.xlane.f32.xlu0 %v496_v45 }
 0x31f   :  { %v2084_v46 = vpop.permute.xlu1 %2083 }
 0x320   :  { %v2085_v18 = vunpack.i.l.bf16 %v2084_v46  ;;  %v2086_v20 = vunpack.i.h.bf16 %v2084_v46 }
 0x321   :  { %v498_v47 = vpop.f32.mrf.mxu1 }
 0x322   :  { %v499_v35 = vadd.f32 %v498_v47, %v383_v48  ;;  %v2853_v48 = vpop.permute.xlu0 %320 }
 0x323   :  { %v367_v47 = vmul.f32 %v2853_v48, %v2624_v57 }
 0x324   :  { %509 = vmax.xlane.f32.xlu2 %v499_v35 }
 0x325   :  { %v2112_v46 = vpack.i.bf16 %v366_v63, %v367_v47  ;;  %v712_v47 = vld [vmem:[%s3476_s7 + $0x18] sm:$0xff]  ;;  %v711_v63 = vld [vmem:[%s3476_s7 + $0x10] sm:$0xff] }
 0x326   :  { %737 = vmatpush.msrb.mxu0 %v712_v47 }
 0x327   :  { %v2089_v11 = vpop.permute.xlu1 %2088 }
 0x328   :  { %v2090_v39 = vunpack.i.l.bf16 %v2089_v11  ;;  %v2091_v54 = vunpack.i.h.bf16 %v2089_v11  ;;  %738 = vmatpush.msrb.mxu0 %v711_v63 }
 0x329   :  { %v501_v52 = vpop.f32.mrf.mxu1 }
 0x32a   :  { %v502_v51 = vadd.f32 %v501_v52, %v384_v1  ;;  %591 = vmatpush.msra.mxu2 %v2090_v39 }
 0x32c   :  { %592 = vmatpush.msra.mxu2 %v2091_v54  ;;  %511 = vmax.xlane.f32.xlu1 %v502_v51 }
 0x32e   :  { %593 = vmatpush.msra.mxu2 %v2080_v62 }
 0x32f   :  { %v2094_v7 = vpop.permute.xlu1 %2093 }
 0x330   :  { %594 = vmatpush.msra.mxu2 %v2081_v5  ;;  %2103 = vrot.lane.b32.xlu0 %v2102_v2, %s2314_s20  ;;  %v2095_v8 = vunpack.i.l.bf16 %v2094_v7  ;;  %v2096_v15 = vunpack.i.h.bf16 %v2094_v7 }
 0x331   :  { %v504_v11 = vpop.f32.mrf.mxu1 }
 0x332   :  { %595 = vmatpush.msra.mxu2 %v2095_v8  ;;  %v505_v1 = vadd.f32 %v504_v11, %v385_v6  ;;  %v710_v6 = vld [vmem:[%s3476_s7 + $0x8] sm:$0xff]  ;;  %v709_v11 = vld [vmem:[%s3476_s7] sm:$0xff] }
 0x333   :  { %739 = vmatpush.msrb.mxu0 %v710_v6 }
 0x334   :  { %596 = vmatpush.msra.mxu2 %v2096_v15 }
 0x335   :  { %740 = vmatpush.msrb.mxu0 %v709_v11 }
 0x336   :  { %597 = vmatpush.msra.mxu2 %v2085_v18 }
 0x337   :  { %v2099_v27 = vpop.permute.xlu1 %2098 }
 0x338   :  { %598 = vmatpush.msra.mxu2 %v2086_v20  ;;  %v2100_v31 = vunpack.i.l.bf16 %v2099_v27  ;;  %v2101_v19 = vunpack.i.h.bf16 %v2099_v27 }
 0x33a   :  { %599 = vmatpush.msra.mxu2 %v2100_v31 }
 0x33c   :  { %2108 = vrot.lane.b32.xlu2 %v2107_v38, %s2314_s20  ;;  %600 = vmatpush.msra.mxu2 %v2101_v19 }
 0x345   :  { %2113 = vrot.lane.b32.xlu1 %v2112_v46, %s2314_s20 }
 0x35a   :  { %513 = vmax.xlane.f32.xlu0 %v505_v1 }
 0x38f   :  { %v508_v39 = vpop.xlane.xlu0 %507 }
 0x390   :  { %v515_v23 = vsub.f32 %v496_v45, %v508_v39 }
 0x392   :  { %v519_v52 = vmul.f32 1.442695, %v515_v23 }
 0x394   :  { %2185 = vpow2.f32 %v519_v52 }
 0x397   :  { %v510_v41 = vpop.xlane.xlu2 %509 }
 0x398   :  { %v516_v54 = vsub.f32 %v499_v35, %v510_v41 }
 0x39a   :  { %v2186_v57 = vpop.eup %2185  ;;  %v521_v56 = vmul.f32 1.442695, %v516_v54 }
 0x39b   :  { %636 = vmatmul.f32.vlgmr.msra.gmra.mxu3 %v2186_v57 }
 0x39c   :  { %2187 = vpow2.f32 %v521_v56 }
 0x39f   :  { %v512_v16 = vpop.xlane.xlu1 %511  ;;  %v2109_v15 = vpop.permute.xlu2 %2108 }
 0x3a0   :  { %v517_v62 = vsub.f32 %v502_v51, %v512_v16  ;;  %v2110_v45 = vunpack.i.l.bf16 %v2109_v15  ;;  %v2111_v21 = vunpack.i.h.bf16 %v2109_v15 }
 0x3a2   :  { %v2188_v2 = vpop.eup %2187  ;;  %v523_v5 = vmul.f32 1.442695, %v517_v62  ;;  %v2104_v7 = vpop.permute.xlu0 %2103 }
 0x3a3   :  { %639 = vmatmul.f32.gmra.mxu3 %v2188_v2  ;;  %v2105_v8 = vunpack.i.l.bf16 %v2104_v7  ;;  %v2106_v18 = vunpack.i.h.bf16 %v2104_v7 }
 0x3a4   :  { %2189 = vpow2.f32 %v523_v5 }
 0x3a5   :  { %601 = vmatpush.msra.mxu2 %v2105_v8 }
 0x3a7   :  { %602 = vmatpush.msra.mxu2 %v2106_v18 }
 0x3a9   :  { %603 = vmatpush.msra.mxu2 %v2110_v45 }
 0x3aa   :  { %v2190_v35 = vpop.eup %2189 }
 0x3ab   :  { %604 = vmatpush.msra.mxu2 %v2111_v21  ;;  %642 = vmatmul.f32.gmra.mxu3 %v2190_v35 }
 0x3b7   :  { %v2114_v20 = vpop.permute.xlu1 %2113 }
 0x3b8   :  { %v2115_v27 = vunpack.i.l.bf16 %v2114_v20  ;;  %v2116_v51 = vunpack.i.h.bf16 %v2114_v20 }
 0x3ba   :  { %605 = vmatpush.msra.mxu2 %v2115_v27 }
 0x3bc   :  { %606 = vmatpush.msra.mxu2 %v2116_v51 }
 0x3bd   :  { %607 = vmatmul.f32.vlgmr.msra.gmra.mxu2 %v2186_v57 }
 0x3c5   :  { %610 = vmatmul.f32.gmra.mxu2 %v2188_v2 }
 0x3cd   :  { %v514_v28 = vpop.xlane.xlu0 %513  ;;  %613 = vmatmul.f32.gmra.mxu2 %v2190_v35 }
 0x3ce   :  { %v518_v31 = vsub.f32 %v505_v1, %v514_v28 }
 0x3d0   :  { %v525_v38 = vmul.f32 1.442695, %v518_v31 }
 0x3d2   :  { %2191 = vpow2.f32 %v525_v38 }
 0x3d8   :  { %v2192_v19 = vpop.eup %2191 }
 0x3d9   :  { %616 = vmatmul.f32.gmra.mxu2 %v2192_v19  ;;  %645 = vmatmul.f32.gmra.mxu3 %v2192_v19 }
 0x41e   :  { %v637_v46 = vpop.f32.mrf.mxu3 }
 0x41f   :  { %2193 = vrcp.f32 %v637_v46  ;;  %v660_v5 = vand.u32 2147483648, %v637_v46  ;;  %vm654_vm15 = vweird.f32 %v637_v46  ;;  %v658_v7 = vand.u32 2147483647, %v637_v46 }
 0x421   :  { %v661_v45 = vor.u32 1.1754944e-38, %v660_v5  ;;  %vm659_vm2 = vcmp.eq.f32.partialorder %v658_v7, 8.507059e+37 }
 0x425   :  { %v2194_v39 = vpop.eup %2193 }
 0x426   :  { %v640_v1 = vpop.f32.mrf.mxu3  ;;  %v650_v23 = vmul.f32 %v2194_v39, %v637_v46  ;;  %vm655_vm14 = vweird.f32 %v2194_v39 }
 0x427   :  { %2195 = vrcp.f32 %v640_v1  ;;  %vm656_vm1 = vmor %vm654_vm15, %vm655_vm14  ;;  %v675_v28 = vand.u32 2147483648, %v640_v1  ;;  %vm669_vm4 = vweird.f32 %v640_v1  ;;  %v673_v31 = vand.u32 2147483647, %v640_v1 }
 0x428   :  { %v651_v52 = vsub.f32 1.0, %v650_v23 }
 0x429   :  { %v676_v47 = vor.u32 1.1754944e-38, %v675_v28  ;;  %vm674_vm6 = vcmp.eq.f32.partialorder %v673_v31, 8.507059e+37  ;;  %v2265_v28 = vld [vmem:[%s3491_s26] sm:$0xff] }
 0x42a   :  { %v652_v56 = vmul.f32 %v2194_v39, %v651_v52 }
 0x42c   :  { %v653_v62 = vadd.f32 %v2194_v39, %v652_v56 }
 0x42d   :  { %v2196_v54 = vpop.eup %2195 }
 0x42e   :  { %v643_v41 = vpop.f32.mrf.mxu3  ;;  %v665_v57 = vmul.f32 %v2196_v54, %v640_v1  ;;  %v657_v15 = vsel %vm656_vm1, %v2194_v39, %v653_v62  ;;  %vm670_vm3 = vweird.f32 %v2196_v54 }
 0x42f   :  { %2197 = vrcp.f32 %v643_v41  ;;  %v662_v35 = vsel %vm659_vm2, %v661_v45, %v657_v15  ;;  %vm671_vm5 = vmor %vm669_vm4, %vm670_vm3  ;;  %v690_v39 = vand.u32 2147483648, %v643_v41  ;;  %vm684_vm8 = vweird.f32 %v643_v41 }
 0x430   :  { %v666_v16 = vsub.f32 1.0, %v665_v57  ;;  %v688_v23 = vand.u32 2147483647, %v643_v41 }
 0x431   :  { %v691_v57 = vor.u32 1.1754944e-38, %v690_v39 }
 0x432   :  { %v667_v18 = vmul.f32 %v2196_v54, %v666_v16  ;;  %vm689_vm10 = vcmp.eq.f32.partialorder %v688_v23, 8.507059e+37  ;;  %v2267_v23 = vld [vmem:[%s3491_s26 + $0x10] sm:$0xff] }
 0x434   :  { %v668_v51 = vadd.f32 %v2196_v54, %v667_v18 }
 0x435   :  { %v2198_v2 = vpop.eup %2197 }
 0x436   :  { %v680_v8 = vmul.f32 %v2198_v2, %v643_v41  ;;  %v672_v38 = vsel %vm671_vm5, %v2196_v54, %v668_v51  ;;  %vm685_vm7 = vweird.f32 %v2198_v2 }
 0x437   :  { %v677_v46 = vsel %vm674_vm6, %v676_v47, %v672_v38  ;;  %vm686_vm9 = vmor %vm684_vm8, %vm685_vm7 }
 0x438   :  { %v681_v20 = vsub.f32 1.0, %v680_v8 }
 0x43a   :  { %v682_v19 = vmul.f32 %v2198_v2, %v681_v20 }
 0x43c   :  { %v683_v11 = vadd.f32 %v2198_v2, %v682_v19 }
 0x43e   :  { %v687_v52 = vsel %vm686_vm9, %v2198_v2, %v683_v11 }
 0x43f   :  { %v692_v56 = vsel %vm689_vm10, %v691_v57, %v687_v52 }
 0x440   :  { %v608_v21 = vpop.f32.mrf.mxu2 }
 0x441   :  { %v663_v27 = vmul.f32 %v662_v35, %v608_v21 }
 0x443   :  { %1990 = vmatmul.msk.f32.vlgmr.msrb.gmra.mxu0 %vm79_vm0, %v663_v27  ;;  %v2160_v27 = vld [vmem:[%s3477_s8] ss:$0 sm:$0xff] }
 0x448   :  { %v611_v63 = vpop.f32.mrf.mxu2 }
 0x449   :  { %v678_v6 = vmul.f32 %v677_v46, %v611_v63  ;;  %v2266_v63 = vld [vmem:[%s3491_s26 + $0x8] sm:$0xff] }
 0x44b   :  { %1991 = vmatmul.msk.f32.gmra.mxu0 %vm79_vm0, %v678_v6 }
 0x450   :  { %v614_v1 = vpop.f32.mrf.mxu2 }
 0x451   :  { %v693_v54 = vmul.f32 %v692_v56, %v614_v1 }
 0x453   :  { %1992 = vmatmul.msk.f32.gmra.mxu0 %vm79_vm0, %v693_v54  ;;  %v2268_v54 = vld [vmem:[%s3491_s26 + $0x18] sm:$0xff] }
 0x45c   :  { %v646_v16 = vpop.f32.mrf.mxu3  ;;  %v617_v21 = vpop.f32.mrf.mxu2 }
 0x45d   :  { %2199 = vrcp.f32 %v646_v16  ;;  %v705_v8 = vand.u32 2147483648, %v646_v16  ;;  %v703_v18 = vand.u32 2147483647, %v646_v16  ;;  %vm699_vm12 = vweird.f32 %v646_v16 }
 0x45f   :  { %v706_v45 = vor.u32 1.1754944e-38, %v705_v8  ;;  %vm704_vm14 = vcmp.eq.f32.partialorder %v703_v18, 8.507059e+37 }
 0x463   :  { %v2200_v62 = vpop.eup %2199 }
 0x464   :  { %v695_v5 = vmul.f32 %v2200_v62, %v646_v16  ;;  %vm700_vm11 = vweird.f32 %v2200_v62 }
 0x465   :  { %vm701_vm13 = vmor %vm699_vm12, %vm700_vm11 }
 0x466   :  { %v696_v7 = vsub.f32 1.0, %v695_v5 }
 0x468   :  { %v697_v15 = vmul.f32 %v2200_v62, %v696_v7 }
 0x46a   :  { %v698_v41 = vadd.f32 %v2200_v62, %v697_v15 }
 0x46c   :  { %v702_v2 = vsel %vm701_vm13, %v2200_v62, %v698_v41 }
 0x46d   :  { %v707_v35 = vsel %vm704_vm14, %v706_v45, %v702_v2 }
 0x46e   :  { %v708_v20 = vmul.f32 %v707_v35, %v617_v21 }
 0x470   :  { %1993 = vmatmul.msk.f32.gmra.mxu0 %vm79_vm0, %v708_v20 }
 0x4c0   :  { %v742_v51 = vpop.f32.mrf.mxu0 }
 0x4c1   :  { %v754_v31 = vadd.f32 %v2265_v28, %v742_v51 }
 0x4c3   :  { %v2886_v38 = vadd.f32 %v2160_v27, %v754_v31 }
 0x4c5   :  { %v768_v19 = vsel %vm79_vm0, %v2886_v38, 0.0 }
 0x4c6   :  { %769 = vadd.xlane.f32.xlu2 %v768_v19 }
 0x4c8   :  { %v745_v47 = vpop.f32.mrf.mxu0 }
 0x4c9   :  { %v755_v46 = vadd.f32 %v2266_v63, %v745_v47 }
 0x4cb   :  { %v2893_v6 = vadd.f32 %v2160_v27, %v755_v46 }
 0x4cd   :  { %v771_v11 = vsel %vm79_vm0, %v2893_v6, 0.0 }
 0x4ce   :  { %772 = vadd.xlane.f32.xlu1 %v771_v11 }
 0x4d0   :  { %v748_v39 = vpop.f32.mrf.mxu0 }
 0x4d1   :  { %v756_v52 = vadd.f32 %v2267_v23, %v748_v39  ;;  %v873_v23 = vld [vmem:[%s3480_s11 + $0x18] sm:$0xff] }
 0x4d2   :  { %902 = vmatpush.msrb.mxu2 %v873_v23 }
 0x4d3   :  { %v2900_v57 = vadd.f32 %v2160_v27, %v756_v52  ;;  %v872_v52 = vld [vmem:[%s3480_s11 + $0x10] sm:$0xff] }
 0x4d4   :  { %903 = vmatpush.msrb.mxu2 %v872_v52 }
 0x4d5   :  { %v774_v1 = vsel %vm79_vm0, %v2900_v57, 0.0 }
 0x4d6   :  { %775 = vadd.xlane.f32.xlu0 %v774_v1  ;;  %v871_v1 = vld [vmem:[%s3480_s11 + $0x8] sm:$0xff] }
 0x4d7   :  { %904 = vmatpush.msrb.mxu2 %v871_v1  ;;  %v2162_v1 = vld [vmem:[%s3479_s10] ss:$0 sm:$0xff] }
 0x4ed   :  { %v751_v56 = vpop.f32.mrf.mxu0 }
 0x4ee   :  { %v757_v16 = vadd.f32 %v2268_v54, %v751_v56  ;;  %v870_v56 = vld [vmem:[%s3480_s11] sm:$0xff] }
 0x4ef   :  { %905 = vmatpush.msrb.mxu2 %v870_v56 }
 0x4f0   :  { %v2907_v62 = vadd.f32 %v2160_v27, %v757_v16 }
 0x4f2   :  { %v777_v5 = vsel %vm79_vm0, %v2907_v62, 0.0 }
 0x4f3   :  { %778 = vadd.xlane.f32.xlu0 %v777_v5 }
 0x539   :  { %v770_v7 = vpop.xlane.xlu2 %769 }
 0x53a   :  { %v780_v8 = vmul.f32 %v770_v7, %v2424_v14 }
 0x53c   :  { %v784_v15 = vsub.f32 %v2886_v38, %v780_v8 }
 0x53e   :  { %v788_v18 = vmul.f32 %v784_v15, %v784_v15 }
 0x540   :  { %v792_v41 = vsel %vm79_vm0, %v788_v18, 0.0 }
 0x541   :  { %793 = vadd.xlane.f32.xlu2 %v792_v41  ;;  %v773_v45 = vpop.xlane.xlu1 %772 }
 0x542   :  { %v781_v2 = vmul.f32 %v773_v45, %v2424_v14 }
 0x544   :  { %v2916_v21 = vsub.f32 %v2893_v6, %v781_v2 }
 0x546   :  { %v789_v35 = vmul.f32 %v2916_v21, %v2916_v21 }
 0x548   :  { %v795_v20 = vsel %vm79_vm0, %v789_v35, 0.0 }
 0x549   :  { %v776_v27 = vpop.xlane.xlu0 %775  ;;  %796 = vadd.xlane.f32.xlu0 %v795_v20 }
 0x54a   :  { %v782_v51 = vmul.f32 %v776_v27, %v2424_v14 }
 0x54c   :  { %v2923_v28 = vsub.f32 %v2900_v57, %v782_v51 }
 0x54e   :  { %v790_v31 = vmul.f32 %v2923_v28, %v2923_v28 }
 0x550   :  { %v798_v19 = vsel %vm79_vm0, %v790_v31, 0.0 }
 0x551   :  { %799 = vadd.xlane.f32.xlu2 %v798_v19 }
 0x566   :  { %v779_v47 = vpop.xlane.xlu0 %778 }
 0x567   :  { %v783_v63 = vmul.f32 %v779_v47, %v2424_v14 }
 0x569   :  { %v2930_v46 = vsub.f32 %v2907_v62, %v783_v63 }
 0x56b   :  { %v791_v11 = vmul.f32 %v2930_v46, %v2930_v46 }
 0x56d   :  { %v801_v39 = vsel %vm79_vm0, %v791_v11, 0.0  ;;  %v2161_v11 = vld [vmem:[%s3478_s9] ss:$0 sm:$0xff] }
 0x56e   :  { %802 = vadd.xlane.f32.xlu0 %v801_v39 }
 0x5b4   :  { %v794_v54 = vpop.xlane.xlu2 %793 }
 0x5b5   :  { %v804_v16 = vmul.f32 %v794_v54, %v2424_v14 }
 0x5b7   :  { %v808_v5 = vadd.f32 1e-05, %v804_v16 }
 0x5b9   :  { %2201 = vrsqrt.f32 %v808_v5  ;;  %vm818_vm1 = vweird.f32 %v808_v5 }
 0x5bc   :  { %v797_v7 = vpop.xlane.xlu0 %796 }
 0x5bd   :  { %v805_v8 = vmul.f32 %v797_v7, %v2424_v14 }
 0x5bf   :  { %v2202_v18 = vpop.eup %2201  ;;  %v809_v41 = vadd.f32 1e-05, %v805_v8 }
 0x5c0   :  { %v813_v45 = vmul.f32 %v2202_v18, %v808_v5  ;;  %vm819_vm15 = vweird.f32 %v2202_v18 }
 0x5c1   :  { %2203 = vrsqrt.f32 %v809_v41  ;;  %vm820_vm2 = vmor %vm818_vm1, %vm819_vm15  ;;  %vm828_vm4 = vweird.f32 %v809_v41 }
 0x5c2   :  { %v814_v2 = vmul.f32 %v2202_v18, %v813_v45 }
 0x5c4   :  { %v815_v35 = vmul.f32 0.5, %v814_v2  ;;  %v800_v20 = vpop.xlane.xlu2 %799 }
 0x5c5   :  { %v806_v27 = vmul.f32 %v800_v20, %v2424_v14 }
 0x5c6   :  { %v816_v51 = vsub.f32 1.5, %v815_v35 }
 0x5c7   :  { %v2204_v31 = vpop.eup %2203  ;;  %v810_v19 = vadd.f32 1e-05, %v806_v27 }
 0x5c8   :  { %v817_v47 = vmul.f32 %v2202_v18, %v816_v51  ;;  %v823_v63 = vmul.f32 %v2204_v31, %v809_v41  ;;  %vm829_vm3 = vweird.f32 %v2204_v31 }
 0x5c9   :  { %2205 = vrsqrt.f32 %v810_v19  ;;  %vm830_vm5 = vmor %vm828_vm4, %vm829_vm3  ;;  %vm838_vm7 = vweird.f32 %v810_v19 }
 0x5ca   :  { %v821_v39 = vsel %vm820_vm2, %v2202_v18, %v817_v47  ;;  %v824_v23 = vmul.f32 %v2204_v31, %v823_v63 }
 0x5cb   :  { %v852_v52 = vmul.f32 %v821_v39, %v784_v15 }
 0x5cc   :  { %v825_v56 = vmul.f32 0.5, %v824_v23 }
 0x5cd   :  { %v859_v54 = vmul.f32 %v2161_v11, %v852_v52 }
 0x5ce   :  { %v826_v16 = vsub.f32 1.5, %v825_v56  ;;  %v967_v56 = vld [vmem:[%s3482_s13 + $0x60] sm:$0xff] }
 0x5cf   :  { %v2206_v7 = vpop.eup %2205  ;;  %v866_v5 = vadd.f32 %v2162_v1, %v859_v54 }
 0x5d0   :  { %v827_v8 = vmul.f32 %v2204_v31, %v826_v16  ;;  %v833_v45 = vmul.f32 %v2206_v7, %v810_v19  ;;  %vm839_vm6 = vweird.f32 %v2206_v7  ;;  %v968_v19 = vld [vmem:[%s3482_s13 + $0x68] sm:$0xff] }
 0x5d1   :  { %1994 = vmatmul.msk.f32.vlgmr.msrb.gmra.mxu2 %vm79_vm0, %v866_v5  ;;  %vm840_vm8 = vmor %vm838_vm7, %vm839_vm6 }
 0x5d2   :  { %v831_v2 = vsel %vm830_vm5, %v2204_v31, %v827_v8  ;;  %v834_v18 = vmul.f32 %v2206_v7, %v833_v45  ;;  %v970_v31 = vld [vmem:[%s3482_s13 + $0x78] sm:$0xff] }
 0x5d3   :  { %v853_v15 = vmul.f32 %v831_v2, %v2916_v21  ;;  %v969_v21 = vld [vmem:[%s3482_s13 + $0x70] sm:$0xff]  ;;  %971 = vmatpush.msrb.mxu3 %v970_v31 }
 0x5d4   :  { %v835_v35 = vmul.f32 0.5, %v834_v18  ;;  %v957_v31 = vld [vmem:[%s3482_s13 + $0x10] sm:$0xff] }
 0x5d5   :  { %v860_v20 = vmul.f32 %v2161_v11, %v853_v15  ;;  %972 = vmatpush.msrb.mxu3 %v969_v21  ;;  %v956_v21 = vld [vmem:[%s3482_s13 + $0x8] sm:$0xff] }
 0x5d6   :  { %v836_v27 = vsub.f32 1.5, %v835_v35 }
 0x5d7   :  { %v867_v51 = vadd.f32 %v2162_v1, %v860_v20  ;;  %973 = vmatpush.msrb.mxu3 %v968_v19  ;;  %v2269_v19 = vld [vmem:[%s3471_s2 + $0x78] sm:$0xff] }
 0x5d8   :  { %v837_v47 = vmul.f32 %v2206_v7, %v836_v27  ;;  %v966_v27 = vld [vmem:[%s3482_s13 + $0x58] sm:$0xff] }
 0x5d9   :  { %1995 = vmatmul.msk.f32.gmra.mxu2 %vm79_vm0, %v867_v51  ;;  %974 = vmatpush.msrb.mxu3 %v967_v56  ;;  %v965_v51 = vld [vmem:[%s3482_s13 + $0x50] sm:$0xff]  ;;  %v2271_v56 = vld [vmem:[%s3471_s2 + $0x68] sm:$0xff] }
 0x5da   :  { %v841_v63 = vsel %vm840_vm8, %v2206_v7, %v837_v47  ;;  %v964_v47 = vld [vmem:[%s3482_s13 + $0x48] sm:$0xff] }
 0x5db   :  { %v854_v41 = vmul.f32 %v841_v63, %v2923_v28  ;;  %975 = vmatpush.msrb.mxu3 %v966_v27  ;;  %v960_v63 = vld [vmem:[%s3482_s13 + $0x28] sm:$0xff] }
 0x5dd   :  { %v861_v39 = vmul.f32 %v2161_v11, %v854_v41  ;;  %976 = vmatpush.msrb.mxu3 %v965_v51  ;;  %v959_v41 = vld [vmem:[%s3482_s13 + $0x20] sm:$0xff] }
 0x5df   :  { %v868_v23 = vadd.f32 %v2162_v1, %v861_v39  ;;  %977 = vmatpush.msrb.mxu3 %v964_v47  ;;  %v958_v39 = vld [vmem:[%s3482_s13 + $0x18] sm:$0xff] }
 0x5e0   :  { %v2277_v47 = vld [vmem:[%s3471_s2 + $0x38] sm:$0xff] }
 0x5e1   :  { %1996 = vmatmul.msk.f32.gmra.mxu2 %vm79_vm0, %v868_v23  ;;  %v803_v52 = vpop.xlane.xlu0 %802  ;;  %v955_v23 = vld [vmem:[%s3482_s13] sm:$0xff] }
 0x5e2   :  { %v807_v28 = vmul.f32 %v803_v52, %v2424_v14  ;;  %v2270_v52 = vld [vmem:[%s3471_s2 + $0x70] sm:$0xff] }
 0x5e4   :  { %v811_v54 = vadd.f32 1e-05, %v807_v28  ;;  %v3021_v28 = vld [vmem:[%s3481_s12] ss:$0 sm:$0xff] }
 0x5e6   :  { %2207 = vrsqrt.f32 %v811_v54  ;;  %vm848_vm10 = vweird.f32 %v811_v54 }
 0x5ec   :  { %v2208_v16 = vpop.eup %2207 }
 0x5ed   :  { %v843_v7 = vmul.f32 %v2208_v16, %v811_v54  ;;  %vm849_vm9 = vweird.f32 %v2208_v16  ;;  %v2272_v54 = vld [vmem:[%s3471_s2 + $0x60] sm:$0xff] }
 0x5ee   :  { %vm850_vm11 = vmor %vm848_vm10, %vm849_vm9 }
 0x5ef   :  { %v844_v5 = vmul.f32 %v2208_v16, %v843_v7 }
 0x5f1   :  { %v845_v8 = vmul.f32 0.5, %v844_v5  ;;  %v2273_v5 = vld [vmem:[%s3471_s2 + $0x58] sm:$0xff] }
 0x5f3   :  { %v846_v45 = vsub.f32 1.5, %v845_v8 }
 0x5f5   :  { %v847_v2 = vmul.f32 %v2208_v16, %v846_v45  ;;  %v2274_v45 = vld [vmem:[%s3471_s2 + $0x50] sm:$0xff] }
 0x5f7   :  { %v851_v18 = vsel %vm850_vm11, %v2208_v16, %v847_v2 }
 0x5f8   :  { %v855_v15 = vmul.f32 %v851_v18, %v2930_v46  ;;  %v963_v46 = vld [vmem:[%s3482_s13 + $0x40] sm:$0xff]  ;;  %v2275_v18 = vld [vmem:[%s3471_s2 + $0x48] sm:$0xff] }
 0x5f9   :  { %978 = vmatpush.msrb.mxu3 %v963_v46 }
 0x5fa   :  { %v862_v35 = vmul.f32 %v2161_v11, %v855_v15  ;;  %v962_v11 = vld [vmem:[%s3482_s13 + $0x38] sm:$0xff] }
 0x5fb   :  { %979 = vmatpush.msrb.mxu3 %v962_v11 }
 0x5fc   :  { %v869_v20 = vadd.f32 %v2162_v1, %v862_v35  ;;  %v961_v1 = vld [vmem:[%s3482_s13 + $0x30] sm:$0xff]  ;;  %v2276_v35 = vld [vmem:[%s3471_s2 + $0x40] sm:$0xff] }
 0x5fd   :  { %980 = vmatpush.msrb.mxu3 %v961_v1  ;;  %v2278_v1 = vld [vmem:[%s3471_s2 + $0x30] sm:$0xff] }
 0x5fe   :  { %1997 = vmatmul.msk.f32.gmra.mxu2 %vm79_vm0, %v869_v20 }
 0x5ff   :  { %981 = vmatpush.msrb.mxu3 %v960_v63 }
 0x601   :  { %982 = vmatpush.msrb.mxu3 %v959_v41  ;;  %v2279_v41 = vld [vmem:[%s3471_s2 + $0x28] sm:$0xff] }
 0x603   :  { %983 = vmatpush.msrb.mxu3 %v958_v39 }
 0x605   :  { %984 = vmatpush.msrb.mxu3 %v957_v31  ;;  %v2280_v31 = vld [vmem:[%s3471_s2 + $0x20] sm:$0xff] }
 0x607   :  { %985 = vmatpush.msrb.mxu3 %v956_v21 }
 0x609   :  { %986 = vmatpush.msrb.mxu3 %v955_v23 }
 0x60b   :  { %1440 = vmatpush.msra.mxu3 %v2269_v19 }
 0x60d   :  { %1441 = vmatpush.msra.mxu3 %v2270_v52  ;;  %v2281_v52 = vld [vmem:[%s3471_s2 + $0x18] sm:$0xff] }
 0x60f   :  { %1442 = vmatpush.msra.mxu3 %v2271_v56 }
 0x611   :  { %1443 = vmatpush.msra.mxu3 %v2272_v54 }
 0x613   :  { %1444 = vmatpush.msra.mxu3 %v2273_v5  ;;  %v2282_v5 = vld [vmem:[%s3471_s2 + $0x10] sm:$0xff] }
 0x615   :  { %1445 = vmatpush.msra.mxu3 %v2274_v45 }
 0x617   :  { %1446 = vmatpush.msra.mxu3 %v2275_v18  ;;  %v2283_v18 = vld [vmem:[%s3471_s2 + $0x8] sm:$0xff] }
 0x619   :  { %1447 = vmatpush.msra.mxu3 %v2276_v35 }
 0x61b   :  { %1448 = vmatpush.msra.mxu3 %v2277_v47 }
 0x61d   :  { %1449 = vmatpush.msra.mxu3 %v2278_v1 }
 0x61f   :  { %1450 = vmatpush.msra.mxu3 %v2279_v41 }
 0x621   :  { %1451 = vmatpush.msra.mxu3 %v2280_v31 }
 0x623   :  { %1452 = vmatpush.msra.mxu3 %v2281_v52 }
 0x625   :  { %1453 = vmatpush.msra.mxu3 %v2282_v5 }
 0x627   :  { %1454 = vmatpush.msra.mxu3 %v2283_v18 }
 0x654   :  { %v907_v16 = vpop.f32.mrf.mxu2 }
 0x655   :  { %v908_v7 = vadd.f32 %v3021_v28, %v907_v16 }
 0x657   :  { %v923_v8 = vmul.f32 0.044715, %v908_v7 }
 0x659   :  { %v927_v2 = vmul.f32 %v923_v8, %v908_v7  ;;  %v919_v8 = vmul.f32 0.5, %v908_v7 }
 0x65b   :  { %v931_v15 = vmul.f32 %v927_v2, %v908_v7 }
 0x65c   :  { %v910_v20 = vpop.f32.mrf.mxu2 }
 0x65d   :  { %v911_v27 = vadd.f32 %v3021_v28, %v910_v20  ;;  %v935_v51 = vadd.f32 %v931_v15, %v908_v7  ;;  %v2284_v20 = vld [vmem:[%s3471_s2] sm:$0xff] }
 0x65e   :  { %1455 = vmatpush.msra.mxu3 %v2284_v20 }
 0x65f   :  { %v939_v46 = vmul.f32 0.7978846, %v935_v51  ;;  %v924_v11 = vmul.f32 0.044715, %v911_v27  ;;  %v920_v7 = vmul.f32 0.5, %v911_v27 }
 0x661   :  { %2209 = vtanh.f32 %v939_v46  ;;  %v928_v63 = vmul.f32 %v924_v11, %v911_v27 }
 0x663   :  { %v932_v39 = vmul.f32 %v928_v63, %v911_v27 }
 0x664   :  { %v913_v21 = vpop.f32.mrf.mxu2 }
 0x665   :  { %v914_v23 = vadd.f32 %v3021_v28, %v913_v21  ;;  %v936_v19 = vadd.f32 %v932_v39, %v911_v27 }
 0x667   :  { %v2210_v56 = vpop.eup %2209  ;;  %v940_v54 = vmul.f32 0.7978846, %v936_v19  ;;  %v925_v16 = vmul.f32 0.044715, %v914_v23  ;;  %v921_v41 = vmul.f32 0.5, %v914_v23 }
 0x668   :  { %v947_v45 = vadd.f32 1.0, %v2210_v56 }
 0x669   :  { %2211 = vtanh.f32 %v940_v54  ;;  %v929_v2 = vmul.f32 %v925_v16, %v914_v23 }
 0x66a   :  { %v951_v15 = vmul.f32 %v947_v45, %v919_v8 }
 0x66b   :  { %v933_v35 = vmul.f32 %v929_v2, %v914_v23 }
 0x66c   :  { %987 = vmatmul.f32.vlgmr.msrb.gmra.mxu3 %v951_v15 }
 0x66d   :  { %v937_v51 = vadd.f32 %v933_v35, %v914_v23  ;;  %v2164_v23 = vld [vmem:[%s3483_s14] ss:$0 sm:$0xff] }
 0x66f   :  { %v2212_v47 = vpop.eup %2211  ;;  %v941_v46 = vmul.f32 0.7978846, %v937_v51 }
 0x670   :  { %v948_v11 = vadd.f32 1.0, %v2212_v47 }
 0x671   :  { %2213 = vtanh.f32 %v941_v46 }
 0x672   :  { %v952_v1 = vmul.f32 %v948_v11, %v920_v7 }
 0x674   :  { %990 = vmatmul.f32.gmra.mxu3 %v952_v1 }
 0x677   :  { %v2214_v63 = vpop.eup %2213 }
 0x678   :  { %v949_v39 = vadd.f32 1.0, %v2214_v63 }
 0x67a   :  { %v953_v31 = vmul.f32 %v949_v39, %v921_v41 }
 0x67c   :  { %993 = vmatmul.f32.gmra.mxu3 %v953_v31 }
 0x681   :  { %v916_v21 = vpop.f32.mrf.mxu2 }
 0x682   :  { %v917_v19 = vadd.f32 %v3021_v28, %v916_v21 }
 0x684   :  { %v926_v52 = vmul.f32 0.044715, %v917_v19  ;;  %v922_v27 = vmul.f32 0.5, %v917_v19 }
 0x686   :  { %v930_v56 = vmul.f32 %v926_v52, %v917_v19 }
 0x688   :  { %v934_v54 = vmul.f32 %v930_v56, %v917_v19 }
 0x68a   :  { %v938_v16 = vadd.f32 %v934_v54, %v917_v19 }
 0x68c   :  { %v942_v5 = vmul.f32 0.7978846, %v938_v16 }
 0x68e   :  { %2215 = vtanh.f32 %v942_v5 }
 0x694   :  { %v2216_v8 = vpop.eup %2215 }
 0x695   :  { %v950_v45 = vadd.f32 1.0, %v2216_v8 }
 0x697   :  { %v954_v2 = vmul.f32 %v950_v45, %v922_v27 }
 0x699   :  { %996 = vmatmul.f32.gmra.mxu3 %v954_v2 }
 0x6ef   :  { %v988_v18 = vpop.f32.mrf.mxu3 }
 0x6f0   :  { %v1000_v15 = vadd.f32 %v988_v18, %v2886_v38 }
 0x6f2   :  { %v3073_v35 = vadd.f32 %v2164_v23, %v1000_v15 }
 0x6f4   :  { %v1016_v28 = vsel %vm79_vm0, %v3073_v35, 0.0 }
 0x6f5   :  { %1017 = vadd.xlane.f32.xlu2 %v1016_v28 }
 0x6f7   :  { %v991_v20 = vpop.f32.mrf.mxu3 }
 0x6f8   :  { %v1001_v51 = vadd.f32 %v991_v20, %v2893_v6 }
 0x6fa   :  { %v3078_v47 = vadd.f32 %v2164_v23, %v1001_v51 }
 0x6fc   :  { %v1019_v46 = vsel %vm79_vm0, %v3078_v47, 0.0 }
 0x6fd   :  { %1020 = vadd.xlane.f32.xlu0 %v1019_v46  ;;  %v2003_v46 = vld [vmem:[%s3474_s5 + $0x38] sm:$0xff] }
 0x6fe   :  { %1152 = vmatpush.msra.mxu0 %v2003_v46 }
 0x6ff   :  { %v994_v7 = vpop.f32.mrf.mxu3 }
 0x700   :  { %v1002_v11 = vadd.f32 %v994_v7, %v2900_v57  ;;  %v2002_v7 = vld [vmem:[%s3474_s5 + $0x30] sm:$0xff] }
 0x701   :  { %1153 = vmatpush.msra.mxu0 %v2002_v7 }
 0x702   :  { %v3083_v1 = vadd.f32 %v2164_v23, %v1002_v11  ;;  %v2001_v11 = vld [vmem:[%s3474_s5 + $0x28] sm:$0xff] }
 0x703   :  { %1154 = vmatpush.msra.mxu0 %v2001_v11  ;;  %v2166_v11 = vld [vmem:[%s3473_s4 + $0x1] ss:$0 sm:$0xff]  ;;  %s2317_s4 = smov 8  }
 0x704   :  { %v1022_v38 = vsel %vm79_vm0, %v3083_v1, 0.0 }
 0x705   :  { %1023 = vadd.xlane.f32.xlu1 %v1022_v38  ;;  %v2000_v38 = vld [vmem:[%s3474_s5 + $0x20] sm:$0xff] }
 0x706   :  { %1155 = vmatpush.msra.mxu0 %v2000_v38 }
 0x71c   :  { %v997_v63 = vpop.f32.mrf.mxu3 }
 0x71d   :  { %v1003_v41 = vadd.f32 %v997_v63, %v2907_v62 }
 0x71f   :  { %v3088_v39 = vadd.f32 %v2164_v23, %v1003_v41 }
 0x721   :  { %v1025_v6 = vsel %vm79_vm0, %v3088_v39, 0.0 }
 0x722   :  { %1026 = vadd.xlane.f32.xlu2 %v1025_v6 }
 0x768   :  { %v1018_v31 = vpop.xlane.xlu2 %1017 }
 0x769   :  { %v1028_v21 = vmul.f32 %v1018_v31, %v2424_v14 }
 0x76b   :  { %v1032_v57 = vsub.f32 %v3073_v35, %v1028_v21 }
 0x76d   :  { %v1036_v19 = vmul.f32 %v1032_v57, %v1032_v57 }
 0x76f   :  { %v1040_v52 = vsel %vm79_vm0, %v1036_v19, 0.0 }
 0x770   :  { %1041 = vadd.xlane.f32.xlu0 %v1040_v52  ;;  %v1021_v56 = vpop.xlane.xlu0 %1020 }
 0x771   :  { %v1029_v54 = vmul.f32 %v1021_v56, %v2424_v14 }
 0x773   :  { %v3097_v62 = vsub.f32 %v3078_v47, %v1029_v54 }
 0x775   :  { %v1037_v16 = vmul.f32 %v3097_v62, %v3097_v62 }
 0x777   :  { %v1043_v5 = vsel %vm79_vm0, %v1037_v16, 0.0 }
 0x778   :  { %v1024_v8 = vpop.xlane.xlu1 %1023  ;;  %1044 = vadd.xlane.f32.xlu1 %v1043_v5 }
 0x779   :  { %v1030_v27 = vmul.f32 %v1024_v8, %v2424_v14 }
 0x77b   :  { %v3104_v45 = vsub.f32 %v3083_v1, %v1030_v27 }
 0x77d   :  { %v1038_v2 = vmul.f32 %v3104_v45, %v3104_v45 }
 0x77f   :  { %v1046_v23 = vsel %vm79_vm0, %v1038_v2, 0.0 }
 0x780   :  { %1047 = vadd.xlane.f32.xlu2 %v1046_v23 }
 0x795   :  { %v1027_v18 = vpop.xlane.xlu2 %1026 }
 0x796   :  { %v1031_v15 = vmul.f32 %v1027_v18, %v2424_v14 }
 0x798   :  { %v3111_v28 = vsub.f32 %v3088_v39, %v1031_v15 }
 0x79a   :  { %v1039_v20 = vmul.f32 %v3111_v28, %v3111_v28 }
 0x79c   :  { %v1049_v51 = vsel %vm79_vm0, %v1039_v20, 0.0  ;;  %v2165_v20 = vld [vmem:[%s3472_s3 + $0x1] ss:$0 sm:$0xff]  ;;  %s2316_s3 = smov 128  }
 0x79d   :  { %1050 = vadd.xlane.f32.xlu0 %v1049_v51 }
 0x7e3   :  { %v1042_v63 = vpop.xlane.xlu0 %1041 }
 0x7e4   :  { %v1052_v41 = vmul.f32 %v1042_v63, %v2424_v14 }
 0x7e6   :  { %v1056_v6 = vadd.f32 1e-05, %v1052_v41 }
 0x7e8   :  { %2217 = vrsqrt.f32 %v1056_v6  ;;  %vm1066_vm13 = vweird.f32 %v1056_v6 }
 0x7eb   :  { %v1045_v31 = vpop.xlane.xlu1 %1044 }
 0x7ec   :  { %v1053_v21 = vmul.f32 %v1045_v31, %v2424_v14 }
 0x7ee   :  { %v2218_v19 = vpop.eup %2217  ;;  %v1057_v52 = vadd.f32 1e-05, %v1053_v21 }
 0x7ef   :  { %v1061_v56 = vmul.f32 %v2218_v19, %v1056_v6  ;;  %vm1067_vm12 = vweird.f32 %v2218_v19 }
 0x7f0   :  { %2219 = vrsqrt.f32 %v1057_v52  ;;  %vm1068_vm14 = vmor %vm1066_vm13, %vm1067_vm12  ;;  %vm1076_vm1 = vweird.f32 %v1057_v52 }
 0x7f1   :  { %v1062_v54 = vmul.f32 %v2218_v19, %v1061_v56 }
 0x7f3   :  { %v1063_v16 = vmul.f32 0.5, %v1062_v54  ;;  %v1048_v5 = vpop.xlane.xlu2 %1047 }
 0x7f4   :  { %v1054_v8 = vmul.f32 %v1048_v5, %v2424_v14 }
 0x7f5   :  { %v1064_v27 = vsub.f32 1.5, %v1063_v16 }
 0x7f6   :  { %v2220_v2 = vpop.eup %2219  ;;  %v1058_v23 = vadd.f32 1e-05, %v1054_v8 }
 0x7f7   :  { %v1065_v18 = vmul.f32 %v2218_v19, %v1064_v27  ;;  %v1071_v15 = vmul.f32 %v2220_v2, %v1057_v52  ;;  %vm1077_vm15 = vweird.f32 %v2220_v2 }
 0x7f8   :  { %2221 = vrsqrt.f32 %v1058_v23  ;;  %vm1078_vm2 = vmor %vm1076_vm1, %vm1077_vm15  ;;  %vm1086_vm4 = vweird.f32 %v1058_v23 }
 0x7f9   :  { %v1069_v51 = vsel %vm1068_vm14, %v2218_v19, %v1065_v18  ;;  %v1072_v46 = vmul.f32 %v2220_v2, %v1071_v15 }
 0x7fa   :  { %v1100_v7 = vmul.f32 %v1069_v51, %v1032_v57 }
 0x7fb   :  { %v1073_v38 = vmul.f32 0.5, %v1072_v46 }
 0x7fc   :  { %v1107_v63 = vmul.f32 %v2165_v20, %v1100_v7 }
 0x7fd   :  { %v1074_v41 = vsub.f32 1.5, %v1073_v38 }
 0x7fe   :  { %v2222_v31 = vpop.eup %2221  ;;  %v1114_v6 = vadd.f32 %v2166_v11, %v1107_v63 }
 0x7ff   :  { %v1075_v21 = vmul.f32 %v2220_v2, %v1074_v41  ;;  %v1081_v56 = vmul.f32 %v2222_v31, %v1058_v23  ;;  %vm1087_vm3 = vweird.f32 %v2222_v31 }
 0x800   :  { %2005 = vmatmul.msk.f32.vlgmr.msra.gmra.mxu0 %vm79_vm0, %v1114_v6  ;;  %vm1088_vm5 = vmor %vm1086_vm4, %vm1087_vm3 }
 0x801   :  { %v1079_v54 = vsel %vm1078_vm2, %v2220_v2, %v1075_v21  ;;  %v1082_v19 = vmul.f32 %v2222_v31, %v1081_v56 }
 0x802   :  { %v1101_v57 = vmul.f32 %v1079_v54, %v3097_v62 }
 0x803   :  { %v1083_v16 = vmul.f32 0.5, %v1082_v19 }
 0x804   :  { %v1108_v5 = vmul.f32 %v2165_v20, %v1101_v57  ;;  %v2167_v57 = vld [vmem:[%s3475_s6 + $0x1] ss:$0 sm:$0xff] }
 0x805   :  { %v1084_v8 = vsub.f32 1.5, %v1083_v16 }
 0x806   :  { %v1115_v27 = vadd.f32 %v2166_v11, %v1108_v5 }
 0x807   :  { %v1085_v18 = vmul.f32 %v2222_v31, %v1084_v8 }
 0x808   :  { %2006 = vmatmul.msk.f32.gmra.mxu0 %vm79_vm0, %v1115_v27 }
 0x809   :  { %v1089_v15 = vsel %vm1088_vm5, %v2222_v31, %v1085_v18 }
 0x80a   :  { %v1102_v52 = vmul.f32 %v1089_v15, %v3104_v45 }
 0x80c   :  { %v1109_v51 = vmul.f32 %v2165_v20, %v1102_v52 }
 0x80e   :  { %v1116_v46 = vadd.f32 %v2166_v11, %v1109_v51 }
 0x810   :  { %2007 = vmatmul.msk.f32.gmra.mxu0 %vm79_vm0, %v1116_v46  ;;  %v1051_v2 = vpop.xlane.xlu0 %1050 }
 0x811   :  { %v1055_v62 = vmul.f32 %v1051_v2, %v2424_v14 }
 0x813   :  { %v1059_v7 = vadd.f32 1e-05, %v1055_v62 }
 0x815   :  { %2223 = vrsqrt.f32 %v1059_v7  ;;  %vm1096_vm7 = vweird.f32 %v1059_v7 }
 0x81b   :  { %v2224_v38 = vpop.eup %2223 }
 0x81c   :  { %v1091_v63 = vmul.f32 %v2224_v38, %v1059_v7  ;;  %vm1097_vm6 = vweird.f32 %v2224_v38 }
 0x81d   :  { %vm1098_vm8 = vmor %vm1096_vm7, %vm1097_vm6 }
 0x81e   :  { %v1092_v41 = vmul.f32 %v2224_v38, %v1091_v63 }
 0x820   :  { %v1093_v6 = vmul.f32 0.5, %v1092_v41 }
 0x822   :  { %v1094_v23 = vsub.f32 1.5, %v1093_v6 }
 0x824   :  { %v1095_v21 = vmul.f32 %v2224_v38, %v1094_v23 }
 0x826   :  { %v1099_v31 = vsel %vm1098_vm8, %v2224_v38, %v1095_v21 }
 0x827   :  { %v1103_v45 = vmul.f32 %v1099_v31, %v3111_v28 }
 0x829   :  { %v1110_v56 = vmul.f32 %v2165_v20, %v1103_v45 }
 0x82b   :  { %v1117_v54 = vadd.f32 %v2166_v11, %v1110_v56 }
 0x82d   :  { %2008 = vmatmul.msk.f32.gmra.mxu0 %vm79_vm0, %v1117_v54 }
 0x87d   :  { %v1157_v19 = vpop.f32.mrf.mxu0 }
 0x885   :  { %v1160_v16 = vpop.f32.mrf.mxu0 }
 0x886   :  { %v3148_v5 = vadd.f32 %v2167_v57, %v1160_v16 }
 0x888   :  { %v1182_v8 = vmul.f32 %v3148_v5, %v2626_v58  ;;  %v1174_v46 = vmul.f32 %v3148_v5, %v2699_v26 }
 0x88a   :  { %1248 = vrot.lane.b32.xlu0 %v1182_v8, %s2313_s24 }
 0x88d   :  { %v1163_v27 = vpop.f32.mrf.mxu0 }
 0x88e   :  { %v3153_v18 = vadd.f32 %v2167_v57, %v1163_v27 }
 0x890   :  { %v1183_v28 = vmul.f32 %v3153_v18, %v2641_v0  ;;  %v1179_v20 = vmul.f32 %v3153_v18, %v2650_v4  ;;  %v3172_v0 = vadd.f32 %v2167_v57, %v1157_v19 }
 0x892   :  { %1250 = vrot.lane.b32.xlu2 %v1183_v28, %s2313_s24  ;;  %v1181_v4 = vmul.f32 %v3172_v0, %v2631_v60  ;;  %v1170_v60 = vmul.f32 %v3148_v5, %v2710_v36  ;;  %v1193_v26 = vmul.f32 %v3172_v0, %v2793_v61  ;;  %v1198_v61 = vmul.f32 %v3148_v5, %v2782_v29 }
 0x89a   :  { %1242 = vrot.lane.b32.xlu2 %v1179_v20, %s2313_s24 }
 0x8aa   :  { %v1166_v11 = vpop.f32.mrf.mxu0 }
 0x8ab   :  { %v3161_v15 = vadd.f32 %v2167_v57, %v1166_v11 }
 0x8ad   :  { %v1184_v58 = vmul.f32 %v3161_v15, %v2619_v53  ;;  %v1180_v52 = vmul.f32 %v3161_v15, %v2666_v12  ;;  %v1176_v51 = vmul.f32 %v3161_v15, %v2664_v10  ;;  %v1177_v53 = vmul.f32 %v3172_v0, %v2693_v24 }
 0x8ae   :  { %v1173_v12 = vmul.f32 %v3172_v0, %v2678_v17  ;;  %v1178_v10 = vmul.f32 %v3148_v5, %v2645_v3  ;;  %v1175_v17 = vmul.f32 %v3153_v18, %v2660_v9  ;;  %v1171_v24 = vmul.f32 %v3153_v18, %v2721_v43 }
 0x8af   :  { %1252 = vrot.lane.b32.xlu1 %v1184_v58, %s2313_s24  ;;  %1244 = vrot.lane.b32.xlu0 %v1180_v52, %s2313_s24  ;;  %v1194_v3 = vmul.f32 %v3148_v5, %v2791_v59  ;;  %v1172_v2 = vmul.f32 %v3161_v15, %v2705_v33  ;;  %v1200_v9 = vmul.f32 %v3161_v15, %v2771_v44 }
 0x8b0   :  { %1236 = vrot.lane.b32.xlu2 %v1176_v51, %s2313_s24  ;;  %v1199_v43 = vmul.f32 %v3153_v18, %v2773_v32  ;;  %v1169_v59 = vmul.f32 %v3172_v0, %v2717_v42  ;;  %v1196_v33 = vmul.f32 %v3161_v15, %v2780_v50  ;;  %v1195_v44 = vmul.f32 %v3153_v18, %v2806_v13 }
 0x8b1   :  { %v2122_v36 = vpack.i.bf16 %v1193_v26, %v1194_v3  ;;  %v1197_v32 = vmul.f32 %v3172_v0, %v2776_v49  ;;  %v1192_v42 = vmul.f32 %v3161_v15, %v2815_v22  ;;  %v1191_v50 = vmul.f32 %v3153_v18, %v2818_v25 }
 0x8b2   :  { %v2127_v62 = vpack.i.bf16 %v1199_v43, %v1200_v9  ;;  %v2132_v7 = vpack.i.bf16 %v1195_v44, %v1196_v33  ;;  %v2011_v43 = vld [vmem:[%s3494_s0 + $0x30] sm:$0xff]  ;;  %v1190_v33 = vmul.f32 %v3148_v5, %v2825_v34 }
 0x8b3   :  { %v2117_v38 = vpack.i.bf16 %v1197_v32, %v1198_v61  ;;  %v2137_v63 = vpack.i.bf16 %v1191_v50, %v1192_v42  ;;  %v1189_v61 = vmul.f32 %v3172_v0, %v2839_v55  ;;  %v1188_v32 = vmul.f32 %v3161_v15, %v2827_v30  ;;  %v2012_v55 = vld [vmem:[%s3494_s0 + $0x38] sm:$0xff] }
 0x8b4   :  { %v1185_v50 = vmul.f32 %v3172_v0, %v2837_v40 }
 0x8b5   :  { %v2142_v44 = vpack.i.bf16 %v1189_v61, %v1190_v33 }
 0x8b7   :  { %1246 = vrot.lane.b32.xlu1 %v1181_v4, %s2313_s24  ;;  %1238 = vrot.lane.b32.xlu0 %v1177_v53, %s2313_s24 }
 0x8b8   :  { %1230 = vrot.lane.b32.xlu2 %v1173_v12, %s2313_s24 }
 0x8bf   :  { %1240 = vrot.lane.b32.xlu1 %v1178_v10, %s2313_s24  ;;  %1232 = vrot.lane.b32.xlu0 %v1174_v46, %s2313_s24 }
 0x8c0   :  { %1224 = vrot.lane.b32.xlu2 %v1170_v60, %s2313_s24 }
 0x8c7   :  { %1234 = vrot.lane.b32.xlu1 %v1175_v17, %s2313_s24  ;;  %1226 = vrot.lane.b32.xlu0 %v1171_v24, %s2313_s24  ;;  %v2009_v24 = vld [vmem:[%s3494_s0 + $0x20] sm:$0xff] }
 0x8cf   :  { %2123 = vrot.lane.b32.xlu0 %v2122_v36, %s2314_s20  ;;  %1228 = vrot.lane.b32.xlu1 %v1172_v2, %s2313_s24  ;;  %v2010_v36 = vld [vmem:[%s3494_s0 + $0x28] sm:$0xff] }
 0x8d7   :  { %2128 = vrot.lane.b32.xlu0 %v2127_v62, %s2314_s20  ;;  %1222 = vrot.lane.b32.xlu1 %v1169_v59, %s2313_s24 }
 0x8df   :  { %2133 = vrot.lane.b32.xlu0 %v2132_v7, %s2314_s20  ;;  %2118 = vrot.lane.b32.xlu1 %v2117_v38, %s2314_s20  ;;  %v1187_v7 = vmul.f32 %v3153_v18, %v2829_v37  ;;  %v1186_v38 = vmul.f32 %v3148_v5, %v2853_v48 }
 0x8e1   :  { %v2147_v42 = vpack.i.bf16 %v1187_v7, %v1188_v32  ;;  %v2152_v34 = vpack.i.bf16 %v1185_v50, %v1186_v38 }
 0x8e7   :  { %2138 = vrot.lane.b32.xlu0 %v2137_v63, %s2314_s20 }
 0x8ec   :  { %v1251_v49 = vpop.permute.xlu2 %1250 }
 0x8f4   :  { %v1243_v25 = vpop.permute.xlu2 %1242 }
 0x8fc   :  { %v1249_v29 = vpop.permute.xlu0 %1248 }
 0x90a   :  { %v1237_v56 = vpop.permute.xlu2 %1236 }
 0x912   :  { %v1231_v28 = vpop.permute.xlu2 %1230 }
 0x91a   :  { %v1225_v53 = vpop.permute.xlu2 %1224 }
 0x921   :  { %v1253_v13 = vpop.permute.xlu1 %1252  ;;  %v1245_v41 = vpop.permute.xlu0 %1244 }
 0x922   :  { %2013 = vmatpush.xpose.msk.msrb.mxu1 %vm79_vm0, %v1253_v13 }
 0x926   :  { %2014 = vmatpush.xpose.msk.msrb.mxu1 %vm79_vm0, %v1251_v49 }
 0x929   :  { %v1247_v6 = vpop.permute.xlu1 %1246  ;;  %v1239_v23 = vpop.permute.xlu0 %1238 }
 0x92a   :  { %2015 = vmatpush.xpose.msk.msrb.mxu1 %vm79_vm0, %v1249_v29 }
 0x92e   :  { %2016 = vmatpush.xpose.msk.msrb.mxu1 %vm79_vm0, %v1247_v6 }
 0x931   :  { %v1241_v22 = vpop.permute.xlu1 %1240  ;;  %v1233_v21 = vpop.permute.xlu0 %1232 }
 0x932   :  { %2017 = vmatpush.xpose.msk.msrb.mxu1 %vm79_vm0, %v1245_v41 }
 0x936   :  { %2018 = vmatpush.xpose.msk.msrb.mxu1 %vm79_vm0, %v1243_v25 }
 0x939   :  { %v1235_v31 = vpop.permute.xlu1 %1234  ;;  %v1227_v45 = vpop.permute.xlu0 %1226 }
 0x93a   :  { %2019 = vmatpush.xpose.msk.msrb.mxu1 %vm79_vm0, %v1241_v22 }
 0x93e   :  { %2020 = vmatpush.xpose.msk.msrb.mxu1 %vm79_vm0, %v1239_v23 }
 0x941   :  { %v1229_v54 = vpop.permute.xlu1 %1228  ;;  %v2124_v19 = vpop.permute.xlu0 %2123 }
 0x942   :  { %2021 = vmatpush.xpose.msk.msrb.mxu1 %vm79_vm0, %v1237_v56  ;;  %v2125_v12 = vunpack.i.l.bf16 %v2124_v19  ;;  %v2126_v46 = vunpack.i.h.bf16 %v2124_v19 }
 0x946   :  { %2022 = vmatpush.xpose.msk.msrb.mxu1 %vm79_vm0, %v1235_v31 }
 0x949   :  { %v1223_v57 = vpop.permute.xlu1 %1222  ;;  %v2129_v16 = vpop.permute.xlu0 %2128 }
 0x94a   :  { %v2130_v8 = vunpack.i.l.bf16 %v2129_v16  ;;  %2023 = vmatpush.xpose.msk.msrb.mxu1 %vm79_vm0, %v1233_v21  ;;  %v2131_v27 = vunpack.i.h.bf16 %v2129_v16 }
 0x94c   :  { %1411 = vmatpush.msra.mxu2 %v2130_v8 }
 0x94e   :  { %2024 = vmatpush.xpose.msk.msrb.mxu1 %vm79_vm0, %v1231_v28  ;;  %1412 = vmatpush.msra.mxu2 %v2131_v27  ;;  %v2036_v28 = vld [vmem:[%s3476_s7 + $0x38] sm:$0xff] }
 0x94f   :  { %1558 = vmatpush.msrb.mxu0 %v2036_v28 }
 0x951   :  { %v2119_v20 = vpop.permute.xlu1 %2118  ;;  %v2134_v11 = vpop.permute.xlu0 %2133 }
 0x952   :  { %v2120_v58 = vunpack.i.l.bf16 %v2119_v20  ;;  %2025 = vmatpush.xpose.msk.msrb.mxu1 %vm79_vm0, %v1229_v54  ;;  %v2121_v52 = vunpack.i.h.bf16 %v2119_v20  ;;  %v2135_v51 = vunpack.i.l.bf16 %v2134_v11  ;;  %v2136_v4 = vunpack.i.h.bf16 %v2134_v11  ;;  %v2035_v20 = vld [vmem:[%s3476_s7 + $0x30] sm:$0xff]  ;;  %v2034_v11 = vld [vmem:[%s3476_s7 + $0x28] sm:$0xff] }
 0x953   :  { %1559 = vmatpush.msrb.mxu0 %v2035_v20 }
 0x954   :  { %1413 = vmatpush.msra.mxu2 %v2120_v58  ;;  %v2033_v58 = vld [vmem:[%s3476_s7 + $0x20] sm:$0xff] }
 0x955   :  { %1560 = vmatpush.msrb.mxu0 %v2034_v11 }
 0x956   :  { %2026 = vmatpush.xpose.msk.msrb.mxu1 %vm79_vm0, %v1227_v45  ;;  %1414 = vmatpush.msra.mxu2 %v2121_v52 }
 0x957   :  { %1561 = vmatpush.msrb.mxu0 %v2033_v58 }
 0x958   :  { %1415 = vmatpush.msra.mxu2 %v2135_v51 }
 0x959   :  { %v2139_v10 = vpop.permute.xlu0 %2138 }
 0x95a   :  { %2027 = vmatpush.xpose.msk.msrb.mxu1 %vm79_vm0, %v1225_v53  ;;  %1416 = vmatpush.msra.mxu2 %v2136_v4  ;;  %v2140_v60 = vunpack.i.l.bf16 %v2139_v10  ;;  %v2141_v17 = vunpack.i.h.bf16 %v2139_v10 }
 0x95c   :  { %1417 = vmatpush.msra.mxu2 %v2125_v12 }
 0x95e   :  { %2028 = vmatpush.xpose.msk.msrb.mxu1 %vm79_vm0, %v1223_v57  ;;  %1418 = vmatpush.msra.mxu2 %v2126_v46 }
 0x960   :  { %1419 = vmatpush.msra.mxu2 %v2140_v60 }
 0x961   :  { %2029 = vmatmul.msk.f32.vlgmr.msrb.gmra.mxu1 %vm79_vm0, %v3172_v0 }
 0x962   :  { %1420 = vmatpush.msra.mxu2 %v2141_v17 }
 0x969   :  { %2030 = vmatmul.msk.f32.gmra.mxu1 %vm79_vm0, %v3148_v5 }
 0x971   :  { %2031 = vmatmul.msk.f32.gmra.mxu1 %vm79_vm0, %v3153_v18 }
 0x979   :  { %2032 = vmatmul.msk.f32.gmra.mxu1 %vm79_vm0, %v3161_v15 }
 0x9de   :  { %v1315_v3 = vpop.f32.mrf.mxu1 }
 0x9df   :  { %v1316_v26 = vadd.f32 %v2009_v24, %v1315_v3 }
 0x9e1   :  { %1327 = vmax.xlane.f32.xlu2 %v1316_v26 }
 0x9e6   :  { %v1318_v2 = vpop.f32.mrf.mxu1 }
 0x9e7   :  { %v1319_v9 = vadd.f32 %v2010_v36, %v1318_v2 }
 0x9e9   :  { %1329 = vmax.xlane.f32.xlu1 %v1319_v9 }
 0x9ee   :  { %v1321_v62 = vpop.f32.mrf.mxu1 }
 0x9ef   :  { %v1322_v59 = vadd.f32 %v2011_v43, %v1321_v62 }
 0x9f1   :  { %1331 = vmax.xlane.f32.xlu0 %v1322_v59 }
 0x9f6   :  { %v1324_v30 = vpop.f32.mrf.mxu1 }
 0x9f7   :  { %v1325_v15 = vadd.f32 %v2012_v55, %v1324_v30 }
 0x9f9   :  { %2143 = vrot.lane.b32.xlu2 %v2142_v44, %s2314_s20 }
 0xa02   :  { %2148 = vrot.lane.b32.xlu1 %v2147_v42, %s2314_s20 }
 0xa05   :  { %2153 = vrot.lane.b32.xlu0 %v2152_v34, %s2314_s20 }
 0xa22   :  { %1333 = vmax.xlane.f32.xlu2 %v1325_v15 }
 0xa54   :  { %v1328_v37 = vpop.xlane.xlu2 %1327 }
 0xa55   :  { %v1335_v18 = vsub.f32 %v1316_v26, %v1328_v37 }
 0xa57   :  { %v1339_v63 = vmul.f32 1.442695, %v1335_v18 }
 0xa59   :  { %2225 = vpow2.f32 %v1339_v63 }
 0xa5c   :  { %v1330_v48 = vpop.xlane.xlu1 %1329  ;;  %v2144_v5 = vpop.permute.xlu2 %2143 }
 0xa5d   :  { %v1336_v29 = vsub.f32 %v1319_v9, %v1330_v48  ;;  %v2145_v40 = vunpack.i.l.bf16 %v2144_v5  ;;  %v2146_v41 = vunpack.i.h.bf16 %v2144_v5 }
 0xa5f   :  { %v2226_v0 = vpop.eup %2225  ;;  %v1341_v13 = vmul.f32 1.442695, %v1336_v29  ;;  %1421 = vmatpush.msra.mxu2 %v2145_v40 }
 0xa60   :  { %1456 = vmatmul.f32.vlgmr.msra.gmra.mxu3 %v2226_v0 }
 0xa61   :  { %2227 = vpow2.f32 %v1341_v13  ;;  %1422 = vmatpush.msra.mxu2 %v2146_v41 }
 0xa64   :  { %v1332_v49 = vpop.xlane.xlu0 %1331 }
 0xa65   :  { %v1337_v6 = vsub.f32 %v1322_v59, %v1332_v49 }
 0xa67   :  { %v2228_v23 = vpop.eup %2227  ;;  %v1343_v22 = vmul.f32 1.442695, %v1337_v6 }
 0xa68   :  { %1459 = vmatmul.f32.gmra.mxu3 %v2228_v23 }
 0xa69   :  { %2229 = vpow2.f32 %v1343_v22 }
 0xa6f   :  { %v2230_v21 = vpop.eup %2229 }
 0xa70   :  { %1462 = vmatmul.f32.gmra.mxu3 %v2230_v21 }
 0xa74   :  { %v2149_v25 = vpop.permute.xlu1 %2148 }
 0xa75   :  { %v2150_v31 = vunpack.i.l.bf16 %v2149_v25  ;;  %v2151_v45 = vunpack.i.h.bf16 %v2149_v25 }
 0xa77   :  { %v2154_v56 = vpop.permute.xlu0 %2153  ;;  %1423 = vmatpush.msra.mxu2 %v2150_v31 }
 0xa78   :  { %v2155_v54 = vunpack.i.l.bf16 %v2154_v56  ;;  %v2156_v19 = vunpack.i.h.bf16 %v2154_v56 }
 0xa79   :  { %1424 = vmatpush.msra.mxu2 %v2151_v45 }
 0xa7b   :  { %1425 = vmatpush.msra.mxu2 %v2155_v54 }
 0xa7d   :  { %1426 = vmatpush.msra.mxu2 %v2156_v19 }
 0xa7e   :  { %1427 = vmatmul.f32.vlgmr.msra.gmra.mxu2 %v2226_v0 }
 0xa86   :  { %1430 = vmatmul.f32.gmra.mxu2 %v2228_v23 }
 0xa8e   :  { %1433 = vmatmul.f32.gmra.mxu2 %v2230_v21 }
 0xa95   :  { %v1334_v57 = vpop.xlane.xlu2 %1333 }
 0xa96   :  { %v1338_v16 = vsub.f32 %v1325_v15, %v1334_v57 }
 0xa98   :  { %v1345_v8 = vmul.f32 1.442695, %v1338_v16  ;;  %v2168_v16 = vld [vmem:[%s3477_s8 + $0x1] ss:$0 sm:$0xff] }
 0xa9a   :  { %2231 = vpow2.f32 %v1345_v8 }
 0xaa0   :  { %v2232_v27 = vpop.eup %2231 }
 0xaa1   :  { %1436 = vmatmul.f32.gmra.mxu2 %v2232_v27  ;;  %1465 = vmatmul.f32.gmra.mxu3 %v2232_v27 }
 0xae3   :  { %v1457_v52 = vpop.f32.mrf.mxu3 }
 0xae4   :  { %2233 = vrcp.f32 %v1457_v52  ;;  %v1480_v36 = vand.u32 2147483648, %v1457_v52  ;;  %vm1474_vm10 = vweird.f32 %v1457_v52  ;;  %v1478_v2 = vand.u32 2147483647, %v1457_v52 }
 0xae6   :  { %v1481_v59 = vor.u32 1.1754944e-38, %v1480_v36  ;;  %vm1479_vm12 = vcmp.eq.f32.partialorder %v1478_v2, 8.507059e+37 }
 0xaea   :  { %v2234_v51 = vpop.eup %2233 }
 0xaeb   :  { %v1460_v4 = vpop.f32.mrf.mxu3  ;;  %v1470_v53 = vmul.f32 %v2234_v51, %v1457_v52  ;;  %vm1475_vm9 = vweird.f32 %v2234_v51 }
 0xaec   :  { %2235 = vrcp.f32 %v1460_v4  ;;  %vm1476_vm11 = vmor %vm1474_vm10, %vm1475_vm9  ;;  %v1495_v38 = vand.u32 2147483648, %v1460_v4  ;;  %vm1489_vm14 = vweird.f32 %v1460_v4  ;;  %v1493_v42 = vand.u32 2147483647, %v1460_v4 }
 0xaed   :  { %v1471_v12 = vsub.f32 1.0, %v1470_v53 }
 0xaee   :  { %v1496_v55 = vor.u32 1.1754944e-38, %v1495_v38  ;;  %vm1494_vm1 = vcmp.eq.f32.partialorder %v1493_v42, 8.507059e+37 }
 0xaef   :  { %v1472_v17 = vmul.f32 %v2234_v51, %v1471_v12 }
 0xaf1   :  { %v1473_v3 = vadd.f32 %v2234_v51, %v1472_v17 }
 0xaf2   :  { %v2236_v10 = vpop.eup %2235 }
 0xaf3   :  { %v1463_v46 = vpop.f32.mrf.mxu3  ;;  %v1485_v60 = vmul.f32 %v2236_v10, %v1460_v4  ;;  %v1477_v43 = vsel %vm1476_vm11, %v2234_v51, %v1473_v3  ;;  %vm1490_vm13 = vweird.f32 %v2236_v10 }
 0xaf4   :  { %2237 = vrcp.f32 %v1463_v46  ;;  %v1482_v61 = vsel %vm1479_vm12, %v1481_v59, %v1477_v43  ;;  %vm1491_vm15 = vmor %vm1489_vm14, %vm1490_vm13  ;;  %v1510_v63 = vand.u32 2147483648, %v1463_v46  ;;  %vm1504_vm3 = vweird.f32 %v1463_v46 }
 0xaf5   :  { %v1486_v24 = vsub.f32 1.0, %v1485_v60  ;;  %v1508_v48 = vand.u32 2147483647, %v1463_v46 }
 0xaf6   :  { %v1511_v29 = vor.u32 1.1754944e-38, %v1510_v63 }
 0xaf7   :  { %v1487_v62 = vmul.f32 %v2236_v10, %v1486_v24  ;;  %vm1509_vm5 = vcmp.eq.f32.partialorder %v1508_v48, 8.507059e+37 }
 0xaf9   :  { %v1488_v7 = vadd.f32 %v2236_v10, %v1487_v62 }
 0xafa   :  { %v2238_v26 = vpop.eup %2237 }
 0xafb   :  { %v1500_v9 = vmul.f32 %v2238_v26, %v1463_v46  ;;  %v1492_v50 = vsel %vm1491_vm15, %v2236_v10, %v1488_v7  ;;  %vm1505_vm2 = vweird.f32 %v2238_v26 }
 0xafc   :  { %v1497_v15 = vsel %vm1494_vm1, %v1496_v55, %v1492_v50  ;;  %vm1506_vm4 = vmor %vm1504_vm3, %vm1505_vm2  ;;  %v2046_v55 = vld [vmem:[%s3480_s11 + $0x30] sm:$0xff] }
 0xafd   :  { %v1501_v44 = vsub.f32 1.0, %v1500_v9 }
 0xaff   :  { %v1502_v34 = vmul.f32 %v2238_v26, %v1501_v44 }
 0xb01   :  { %v1428_v33 = vpop.f32.mrf.mxu2  ;;  %v1503_v18 = vadd.f32 %v2238_v26, %v1502_v34  ;;  %v2047_v34 = vld [vmem:[%s3480_s11 + $0x38] sm:$0xff] }
 0xb02   :  { %v1483_v32 = vmul.f32 %v1482_v61, %v1428_v33  ;;  %1728 = vmatpush.msrb.mxu2 %v2047_v34 }
 0xb03   :  { %v1507_v5 = vsel %vm1506_vm4, %v2238_v26, %v1503_v18 }
 0xb04   :  { %2037 = vmatmul.msk.f32.vlgmr.msrb.gmra.mxu0 %vm79_vm0, %v1483_v32  ;;  %v1512_v0 = vsel %vm1509_vm5, %v1511_v29, %v1507_v5  ;;  %1729 = vmatpush.msrb.mxu2 %v2046_v55 }
 0xb09   :  { %v1431_v30 = vpop.f32.mrf.mxu2 }
 0xb0a   :  { %v1498_v37 = vmul.f32 %v1497_v15, %v1431_v30  ;;  %v2045_v30 = vld [vmem:[%s3480_s11 + $0x28] sm:$0xff]  ;;  %v2044_v15 = vld [vmem:[%s3480_s11 + $0x20] sm:$0xff] }
 0xb0b   :  { %1730 = vmatpush.msrb.mxu2 %v2045_v30 }
 0xb0c   :  { %2038 = vmatmul.msk.f32.gmra.mxu0 %vm79_vm0, %v1498_v37 }
 0xb0d   :  { %1731 = vmatpush.msrb.mxu2 %v2044_v15 }
 0xb11   :  { %v1434_v40 = vpop.f32.mrf.mxu2 }
 0xb12   :  { %v1513_v13 = vmul.f32 %v1512_v0, %v1434_v40 }
 0xb14   :  { %2039 = vmatmul.msk.f32.gmra.mxu0 %vm79_vm0, %v1513_v13 }
 0xb24   :  { %v1466_v41 = vpop.f32.mrf.mxu3  ;;  %v1437_v54 = vpop.f32.mrf.mxu2 }
 0xb25   :  { %2239 = vrcp.f32 %v1466_v41  ;;  %v1525_v22 = vand.u32 2147483648, %v1466_v41  ;;  %v1523_v25 = vand.u32 2147483647, %v1466_v41  ;;  %vm1519_vm7 = vweird.f32 %v1466_v41 }
 0xb27   :  { %v1526_v45 = vor.u32 1.1754944e-38, %v1525_v22  ;;  %vm1524_vm9 = vcmp.eq.f32.partialorder %v1523_v25, 8.507059e+37 }
 0xb2b   :  { %v2240_v49 = vpop.eup %2239 }
 0xb2c   :  { %v1515_v6 = vmul.f32 %v2240_v49, %v1466_v41  ;;  %vm1520_vm6 = vweird.f32 %v2240_v49 }
 0xb2d   :  { %vm1521_vm8 = vmor %vm1519_vm7, %vm1520_vm6 }
 0xb2e   :  { %v1516_v23 = vsub.f32 1.0, %v1515_v6 }
 0xb30   :  { %v1517_v21 = vmul.f32 %v2240_v49, %v1516_v23 }
 0xb32   :  { %v1518_v31 = vadd.f32 %v2240_v49, %v1517_v21 }
 0xb34   :  { %v1522_v56 = vsel %vm1521_vm8, %v2240_v49, %v1518_v31 }
 0xb35   :  { %v1527_v19 = vsel %vm1524_vm9, %v1526_v45, %v1522_v56  ;;  %v2169_v45 = vld [vmem:[%s3478_s9 + $0x1] ss:$0 sm:$0xff] }
 0xb36   :  { %v1528_v57 = vmul.f32 %v1527_v19, %v1437_v54 }
 0xb38   :  { %2040 = vmatmul.msk.f32.gmra.mxu0 %vm79_vm0, %v1528_v57  ;;  %v2170_v57 = vld [vmem:[%s3479_s10 + $0x1] ss:$0 sm:$0xff] }
 0xb81   :  { %v1563_v8 = vpop.f32.mrf.mxu0 }
 0xb82   :  { %v1575_v27 = vadd.f32 %v1563_v8, %v3073_v35 }
 0xb84   :  { %v3300_v28 = vadd.f32 %v2168_v16, %v1575_v27 }
 0xb86   :  { %v1592_v20 = vsel %vm79_vm0, %v3300_v28, 0.0 }
 0xb87   :  { %1593 = vadd.xlane.f32.xlu1 %v1592_v20 }
 0xb89   :  { %v1566_v11 = vpop.f32.mrf.mxu0 }
 0xb8a   :  { %v1576_v58 = vadd.f32 %v1566_v11, %v3078_v47 }
 0xb8c   :  { %v3305_v52 = vadd.f32 %v2168_v16, %v1576_v58 }
 0xb8e   :  { %v1595_v51 = vsel %vm79_vm0, %v3305_v52, 0.0 }
 0xb8f   :  { %1596 = vadd.xlane.f32.xlu0 %v1595_v51 }
 0xb91   :  { %v1569_v4 = vpop.f32.mrf.mxu0 }
 0xb92   :  { %v1577_v53 = vadd.f32 %v1569_v4, %v3083_v1 }
 0xb94   :  { %v3310_v12 = vadd.f32 %v2168_v16, %v1577_v53 }
 0xb96   :  { %v1598_v35 = vsel %vm79_vm0, %v3310_v12, 0.0 }
 0xb97   :  { %1599 = vadd.xlane.f32.xlu2 %v1598_v35 }
 0xbb5   :  { %v1572_v10 = vpop.f32.mrf.mxu0 }
 0xbb6   :  { %v1578_v46 = vadd.f32 %v1572_v10, %v3088_v39 }
 0xbb8   :  { %v3315_v60 = vadd.f32 %v2168_v16, %v1578_v46 }
 0xbba   :  { %v1601_v47 = vsel %vm79_vm0, %v3315_v60, 0.0 }
 0xbbb   :  { %1602 = vadd.xlane.f32.xlu2 %v1601_v47 }
 0xbfa   :  { %v1594_v17 = vpop.xlane.xlu1 %1593 }
 0xbfb   :  { %v1604_v24 = vmul.f32 %v1594_v17, %v2424_v14 }
 0xbfd   :  { %v1608_v1 = vsub.f32 %v3300_v28, %v1604_v24 }
 0xbff   :  { %v1612_v3 = vmul.f32 %v1608_v1, %v1608_v1 }
 0xc01   :  { %v1616_v26 = vsel %vm79_vm0, %v1612_v3, 0.0 }
 0xc02   :  { %1617 = vadd.xlane.f32.xlu1 %v1616_v26  ;;  %v1597_v36 = vpop.xlane.xlu0 %1596 }
 0xc03   :  { %v1605_v2 = vmul.f32 %v1597_v36, %v2424_v14 }
 0xc05   :  { %v3324_v39 = vsub.f32 %v3305_v52, %v1605_v2  ;;  %v2068_v2 = vld [vmem:[%s3482_s13 + $0xf8] sm:$0xff] }
 0xc06   :  { %1798 = vmatpush.msrb.mxu3 %v2068_v2 }
 0xc07   :  { %v1613_v9 = vmul.f32 %v3324_v39, %v3324_v39 }
 0xc09   :  { %v1619_v43 = vsel %vm79_vm0, %v1613_v9, 0.0  ;;  %v2066_v9 = vld [vmem:[%s3482_s13 + $0xe8] sm:$0xff] }
 0xc0a   :  { %v1600_v62 = vpop.xlane.xlu2 %1599  ;;  %1620 = vadd.xlane.f32.xlu2 %v1619_v43 }
 0xc0b   :  { %v1606_v59 = vmul.f32 %v1600_v62, %v2424_v14 }
 0xc0d   :  { %v3331_v33 = vsub.f32 %v3310_v12, %v1606_v59  ;;  %v2065_v59 = vld [vmem:[%s3482_s13 + $0xe0] sm:$0xff] }
 0xc0f   :  { %v1614_v61 = vmul.f32 %v3331_v33, %v3331_v33 }
 0xc11   :  { %v1622_v44 = vsel %vm79_vm0, %v1614_v61, 0.0 }
 0xc12   :  { %1623 = vadd.xlane.f32.xlu1 %v1622_v44 }
 0xc2e   :  { %v1603_v32 = vpop.xlane.xlu2 %1602 }
 0xc2f   :  { %v1607_v7 = vmul.f32 %v1603_v32, %v2424_v14 }
 0xc31   :  { %v3338_v38 = vsub.f32 %v3315_v60, %v1607_v7 }
 0xc33   :  { %v1615_v42 = vmul.f32 %v3338_v38, %v3338_v38 }
 0xc35   :  { %v1625_v50 = vsel %vm79_vm0, %v1615_v42, 0.0 }
 0xc36   :  { %1626 = vadd.xlane.f32.xlu2 %v1625_v50 }
 0xc75   :  { %v1618_v37 = vpop.xlane.xlu1 %1617 }
 0xc76   :  { %v1628_v18 = vmul.f32 %v1618_v37, %v2424_v14  ;;  %v2064_v37 = vld [vmem:[%s3482_s13 + $0xd8] sm:$0xff] }
 0xc78   :  { %v1632_v63 = vadd.f32 1e-05, %v1628_v18  ;;  %v2063_v18 = vld [vmem:[%s3482_s13 + $0xd0] sm:$0xff] }
 0xc7a   :  { %2241 = vrsqrt.f32 %v1632_v63  ;;  %vm1642_vm11 = vweird.f32 %v1632_v63 }
 0xc7d   :  { %v1621_v48 = vpop.xlane.xlu2 %1620 }
 0xc7e   :  { %v1629_v5 = vmul.f32 %v1621_v48, %v2424_v14  ;;  %v2060_v48 = vld [vmem:[%s3482_s13 + $0xb8] sm:$0xff] }
 0xc80   :  { %v2242_v29 = vpop.eup %2241  ;;  %v1633_v40 = vadd.f32 1e-05, %v1629_v5  ;;  %v2059_v5 = vld [vmem:[%s3482_s13 + $0xb0] sm:$0xff] }
 0xc81   :  { %v1637_v0 = vmul.f32 %v2242_v29, %v1632_v63  ;;  %vm1643_vm10 = vweird.f32 %v2242_v29  ;;  %v2062_v63 = vld [vmem:[%s3482_s13 + $0xc8] sm:$0xff] }
 0xc82   :  { %2243 = vrsqrt.f32 %v1633_v40  ;;  %vm1644_vm12 = vmor %vm1642_vm11, %vm1643_vm10  ;;  %vm1652_vm14 = vweird.f32 %v1633_v40 }
 0xc83   :  { %v1638_v13 = vmul.f32 %v2242_v29, %v1637_v0  ;;  %v2056_v0 = vld [vmem:[%s3482_s13 + $0x98] sm:$0xff] }
 0xc85   :  { %v1639_v41 = vmul.f32 0.5, %v1638_v13  ;;  %v1624_v49 = vpop.xlane.xlu1 %1623  ;;  %v2055_v13 = vld [vmem:[%s3482_s13 + $0x90] sm:$0xff] }
 0xc86   :  { %v1630_v6 = vmul.f32 %v1624_v49, %v2424_v14  ;;  %v2053_v49 = vld [vmem:[%s3482_s13 + $0x80] sm:$0xff] }
 0xc87   :  { %v1640_v23 = vsub.f32 1.5, %v1639_v41  ;;  %v2054_v41 = vld [vmem:[%s3482_s13 + $0x88] sm:$0xff] }
 0xc88   :  { %v2244_v22 = vpop.eup %2243  ;;  %v1634_v21 = vadd.f32 1e-05, %v1630_v6  ;;  %v2171_v6 = vld [vmem:[%s3481_s12 + $0x1] ss:$0 sm:$0xff] }
 0xc89   :  { %v1641_v25 = vmul.f32 %v2242_v29, %v1640_v23  ;;  %v1647_v31 = vmul.f32 %v2244_v22, %v1633_v40  ;;  %vm1653_vm13 = vweird.f32 %v2244_v22  ;;  %v2057_v40 = vld [vmem:[%s3482_s13 + $0xa0] sm:$0xff] }
 0xc8a   :  { %2245 = vrsqrt.f32 %v1634_v21  ;;  %vm1654_vm15 = vmor %vm1652_vm14, %vm1653_vm13  ;;  %vm1662_vm2 = vweird.f32 %v1634_v21 }
 0xc8b   :  { %v1645_v56 = vsel %vm1644_vm12, %v2242_v29, %v1641_v25  ;;  %v1648_v54 = vmul.f32 %v2244_v22, %v1647_v31  ;;  %v2058_v29 = vld [vmem:[%s3482_s13 + $0xa8] sm:$0xff] }
 0xc8c   :  { %v1676_v19 = vmul.f32 %v1645_v56, %v1608_v1 }
 0xc8d   :  { %v1649_v16 = vmul.f32 0.5, %v1648_v54 }
 0xc8e   :  { %v1683_v8 = vmul.f32 %v2169_v45, %v1676_v19 }
 0xc8f   :  { %v1650_v27 = vsub.f32 1.5, %v1649_v16 }
 0xc90   :  { %v2246_v20 = vpop.eup %2245  ;;  %v1690_v11 = vadd.f32 %v2170_v57, %v1683_v8 }
 0xc91   :  { %v1651_v58 = vmul.f32 %v2244_v22, %v1650_v27  ;;  %v1657_v51 = vmul.f32 %v2246_v20, %v1634_v21  ;;  %vm1663_vm1 = vweird.f32 %v2246_v20 }
 0xc92   :  { %2049 = vmatmul.msk.f32.vlgmr.msrb.gmra.mxu2 %vm79_vm0, %v1690_v11  ;;  %vm1664_vm3 = vmor %vm1662_vm2, %vm1663_vm1 }
 0xc93   :  { %v1655_v4 = vsel %vm1654_vm15, %v2244_v22, %v1651_v58  ;;  %v1658_v53 = vmul.f32 %v2246_v20, %v1657_v51 }
 0xc94   :  { %v1677_v35 = vmul.f32 %v1655_v4, %v3324_v39  ;;  %v2067_v39 = vld [vmem:[%s3482_s13 + $0xf0] sm:$0xff] }
 0xc95   :  { %v1659_v10 = vmul.f32 0.5, %v1658_v53  ;;  %1799 = vmatpush.msrb.mxu3 %v2067_v39 }
 0xc96   :  { %v1684_v46 = vmul.f32 %v2169_v45, %v1677_v35 }
 0xc97   :  { %v1660_v47 = vsub.f32 1.5, %v1659_v10  ;;  %1800 = vmatpush.msrb.mxu3 %v2066_v9 }
 0xc98   :  { %v1691_v17 = vadd.f32 %v2170_v57, %v1684_v46 }
 0xc99   :  { %v1661_v24 = vmul.f32 %v2246_v20, %v1660_v47  ;;  %1801 = vmatpush.msrb.mxu3 %v2065_v59 }
 0xc9a   :  { %2050 = vmatmul.msk.f32.gmra.mxu2 %vm79_vm0, %v1691_v17 }
 0xc9b   :  { %v1665_v1 = vsel %vm1664_vm3, %v2246_v20, %v1661_v24  ;;  %1802 = vmatpush.msrb.mxu3 %v2064_v37 }
 0xc9c   :  { %v1678_v3 = vmul.f32 %v1665_v1, %v3331_v33 }
 0xc9d   :  { %1803 = vmatpush.msrb.mxu3 %v2063_v18 }
 0xc9e   :  { %v1685_v26 = vmul.f32 %v2169_v45, %v1678_v3 }
 0xc9f   :  { %1804 = vmatpush.msrb.mxu3 %v2062_v63 }
 0xca0   :  { %v1692_v36 = vadd.f32 %v2170_v57, %v1685_v26 }
 0xca2   :  { %2051 = vmatmul.msk.f32.gmra.mxu2 %vm79_vm0, %v1692_v36 }
 0xca9   :  { %v1627_v43 = vpop.xlane.xlu2 %1626 }
 0xcaa   :  { %v1631_v62 = vmul.f32 %v1627_v43, %v2424_v14 }
 0xcac   :  { %v1635_v33 = vadd.f32 1e-05, %v1631_v62 }
 0xcae   :  { %2247 = vrsqrt.f32 %v1635_v33  ;;  %vm1672_vm5 = vweird.f32 %v1635_v33 }
 0xcb4   :  { %v2248_v61 = vpop.eup %2247 }
 0xcb5   :  { %v1667_v44 = vmul.f32 %v2248_v61, %v1635_v33  ;;  %vm1673_vm4 = vweird.f32 %v2248_v61 }
 0xcb6   :  { %vm1674_vm6 = vmor %vm1672_vm5, %vm1673_vm4 }
 0xcb7   :  { %v1668_v32 = vmul.f32 %v2248_v61, %v1667_v44 }
 0xcb9   :  { %v1669_v7 = vmul.f32 0.5, %v1668_v32 }
 0xcbb   :  { %v1670_v42 = vsub.f32 1.5, %v1669_v7 }
 0xcbd   :  { %v1671_v50 = vmul.f32 %v2248_v61, %v1670_v42 }
 0xcbf   :  { %v1675_v34 = vsel %vm1674_vm6, %v2248_v61, %v1671_v50 }
 0xcc0   :  { %v1679_v55 = vmul.f32 %v1675_v34, %v3338_v38  ;;  %v2061_v38 = vld [vmem:[%s3482_s13 + $0xc0] sm:$0xff] }
 0xcc1   :  { %1805 = vmatpush.msrb.mxu3 %v2061_v38 }
 0xcc2   :  { %v1686_v30 = vmul.f32 %v2169_v45, %v1679_v55 }
 0xcc3   :  { %1806 = vmatpush.msrb.mxu3 %v2060_v48 }
 0xcc4   :  { %v1693_v15 = vadd.f32 %v2170_v57, %v1686_v30  ;;  %v2172_v30 = vld [vmem:[%s3483_s14 + $0x1] ss:$0 sm:$0xff] }
 0xcc5   :  { %1807 = vmatpush.msrb.mxu3 %v2059_v5 }
 0xcc6   :  { %2052 = vmatmul.msk.f32.gmra.mxu2 %vm79_vm0, %v1693_v15 }
 0xcc7   :  { %1808 = vmatpush.msrb.mxu3 %v2058_v29 }
 0xcc9   :  { %1809 = vmatpush.msrb.mxu3 %v2057_v40 }
 0xccb   :  { %1810 = vmatpush.msrb.mxu3 %v2056_v0 }
 0xccd   :  { %1811 = vmatpush.msrb.mxu3 %v2055_v13 }
 0xccf   :  { %1812 = vmatpush.msrb.mxu3 %v2054_v41 }
 0xcd1   :  { %1813 = vmatpush.msrb.mxu3 %v2053_v49 }
 0xd15   :  { %v1733_v23 = vpop.f32.mrf.mxu2 }
 0xd16   :  { %v1734_v22 = vadd.f32 %v2171_v6, %v1733_v23 }
 0xd18   :  { %v1749_v21 = vmul.f32 0.044715, %v1734_v22  ;;  %v1745_v53 = vmul.f32 0.5, %v1734_v22 }
 0xd1a   :  { %v1753_v25 = vmul.f32 %v1749_v21, %v1734_v22 }
 0xd1c   :  { %v1757_v31 = vmul.f32 %v1753_v25, %v1734_v22 }
 0xd1d   :  { %v1736_v45 = vpop.f32.mrf.mxu2 }
 0xd1e   :  { %v1737_v56 = vadd.f32 %v2171_v6, %v1736_v45  ;;  %v1761_v54 = vadd.f32 %v1757_v31, %v1734_v22 }
 0xd20   :  { %v1765_v19 = vmul.f32 0.7978846, %v1761_v54  ;;  %v1750_v57 = vmul.f32 0.044715, %v1737_v56  ;;  %v1746_v3 = vmul.f32 0.5, %v1737_v56 }
 0xd22   :  { %2249 = vtanh.f32 %v1765_v19  ;;  %v1754_v16 = vmul.f32 %v1750_v57, %v1737_v56 }
 0xd24   :  { %v1758_v8 = vmul.f32 %v1754_v16, %v1737_v56 }
 0xd25   :  { %v1739_v27 = vpop.f32.mrf.mxu2 }
 0xd26   :  { %v1740_v20 = vadd.f32 %v2171_v6, %v1739_v27  ;;  %v1762_v11 = vadd.f32 %v1758_v8, %v1737_v56 }
 0xd28   :  { %v2250_v58 = vpop.eup %2249  ;;  %v1766_v51 = vmul.f32 0.7978846, %v1762_v11  ;;  %v1751_v4 = vmul.f32 0.044715, %v1740_v20  ;;  %v1747_v39 = vmul.f32 0.5, %v1740_v20 }
 0xd29   :  { %v1773_v35 = vadd.f32 1.0, %v2250_v58 }
 0xd2a   :  { %2251 = vtanh.f32 %v1766_v51  ;;  %v1755_v10 = vmul.f32 %v1751_v4, %v1740_v20 }
 0xd2b   :  { %v1777_v46 = vmul.f32 %v1773_v35, %v1745_v53 }
 0xd2c   :  { %v1759_v47 = vmul.f32 %v1755_v10, %v1740_v20 }
 0xd2d   :  { %1814 = vmatmul.f32.vlgmr.msrb.gmra.mxu3 %v1777_v46 }
 0xd2e   :  { %v1763_v17 = vadd.f32 %v1759_v47, %v1740_v20 }
 0xd30   :  { %v2252_v24 = vpop.eup %2251  ;;  %v1767_v1 = vmul.f32 0.7978846, %v1763_v17 }
 0xd31   :  { %v1774_v26 = vadd.f32 1.0, %v2252_v24 }
 0xd32   :  { %2253 = vtanh.f32 %v1767_v1 }
 0xd33   :  { %v1778_v36 = vmul.f32 %v1774_v26, %v1746_v3 }
 0xd35   :  { %1817 = vmatmul.f32.gmra.mxu3 %v1778_v36 }
 0xd38   :  { %v2254_v2 = vpop.eup %2253 }
 0xd39   :  { %v1775_v9 = vadd.f32 1.0, %v2254_v2 }
 0xd3b   :  { %v1779_v43 = vmul.f32 %v1775_v9, %v1747_v39 }
 0xd3d   :  { %1820 = vmatmul.f32.gmra.mxu3 %v1779_v43 }
 0xd49   :  { %v1742_v62 = vpop.f32.mrf.mxu2 }
 0xd4a   :  { %v1743_v59 = vadd.f32 %v2171_v6, %v1742_v62 }
 0xd4c   :  { %v1752_v33 = vmul.f32 0.044715, %v1743_v59  ;;  %v1748_v50 = vmul.f32 0.5, %v1743_v59 }
 0xd4e   :  { %v1756_v61 = vmul.f32 %v1752_v33, %v1743_v59  ;;  %v2173_v33 = vld [vmem:[%s3484_s15] ss:$0 sm:$0xff]  ;;  %s2315_s15 = smov [#allocation2]  }
 0xd50   :  { %v1760_v44 = vmul.f32 %v1756_v61, %v1743_v59 }
 0xd52   :  { %v1764_v32 = vadd.f32 %v1760_v44, %v1743_v59 }
 0xd54   :  { %v1768_v7 = vmul.f32 0.7978846, %v1764_v32  ;;  %v2174_v32 = vld [vmem:[%s3485_s16] ss:$0 sm:$0xff]  ;;  %s1952_s16 = sshll.u32 %s2315_s15, 4  ;;  %s1953_s16 = int_to_ptr.vmem [resolvable:$true] %s1952_s16 }
 0xd56   :  { %2255 = vtanh.f32 %v1768_v7 }
 0xd5c   :  { %v2256_v42 = vpop.eup %2255 }
 0xd5d   :  { %v1776_v34 = vadd.f32 1.0, %v2256_v42 }
 0xd5f   :  { %v1780_v55 = vmul.f32 %v1776_v34, %v1748_v50 }
 0xd61   :  { %1823 = vmatmul.f32.gmra.mxu3 %v1780_v55 }
 0xdb0   :  { %v1815_v15 = vpop.f32.mrf.mxu3 }
 0xdb1   :  { %v1827_v37 = vadd.f32 %v1815_v15, %v3300_v28 }
 0xdb3   :  { %v1836_v18 = vadd.f32 %v2172_v30, %v1827_v37 }
 0xdb5   :  { %v1842_v63 = vsel %vm79_vm0, %v1836_v18, 0.0 }
 0xdb6   :  { %1843 = vadd.xlane.f32.xlu0 %v1842_v63 }
 0xdb8   :  { %v1818_v38 = vpop.f32.mrf.mxu3 }
 0xdb9   :  { %v1828_v48 = vadd.f32 %v1818_v38, %v3305_v52 }
 0xdbb   :  { %v1837_v5 = vadd.f32 %v2172_v30, %v1828_v48 }
 0xdbd   :  { %v1845_v29 = vsel %vm79_vm0, %v1837_v5, 0.0 }
 0xdbe   :  { %1846 = vadd.xlane.f32.xlu1 %v1845_v29 }
 0xdc0   :  { %v1821_v40 = vpop.f32.mrf.mxu3 }
 0xdc1   :  { %v1829_v0 = vadd.f32 %v1821_v40, %v3310_v12 }
 0xdc3   :  { %v1838_v13 = vadd.f32 %v2172_v30, %v1829_v0 }
 0xdc5   :  { %v1848_v41 = vsel %vm79_vm0, %v1838_v13, 0.0 }
 0xdc6   :  { %1849 = vadd.xlane.f32.xlu2 %v1848_v41 }
 0xde4   :  { %v1824_v49 = vpop.f32.mrf.mxu3 }
 0xde5   :  { %v1830_v28 = vadd.f32 %v1824_v49, %v3315_v60 }
 0xde7   :  { %v1839_v6 = vadd.f32 %v2172_v30, %v1830_v28 }
 0xde9   :  { %v1851_v23 = vsel %vm79_vm0, %v1839_v6, 0.0 }
 0xdea   :  { %1852 = vadd.xlane.f32.xlu0 %v1851_v23 }
 0xe29   :  { %v1844_v22 = vpop.xlane.xlu0 %1843 }
 0xe2a   :  { %v1854_v52 = vmul.f32 %v1844_v22, %v2424_v14 }
 0xe2c   :  { %v1858_v21 = vsub.f32 %v1836_v18, %v1854_v52 }
 0xe2e   :  { %v1862_v25 = vmul.f32 %v1858_v21, %v1858_v21 }
 0xe30   :  { %v1866_v31 = vsel %vm79_vm0, %v1862_v25, 0.0 }
 0xe31   :  { %1867 = vadd.xlane.f32.xlu1 %v1866_v31  ;;  %v1847_v12 = vpop.xlane.xlu1 %1846 }
 0xe32   :  { %v1855_v45 = vmul.f32 %v1847_v12, %v2424_v14 }
 0xe34   :  { %v1859_v56 = vsub.f32 %v1837_v5, %v1855_v45 }
 0xe36   :  { %v1863_v54 = vmul.f32 %v1859_v56, %v1859_v56 }
 0xe38   :  { %v1869_v19 = vsel %vm79_vm0, %v1863_v54, 0.0 }
 0xe39   :  { %1870 = vadd.xlane.f32.xlu2 %v1869_v19  ;;  %v1850_v60 = vpop.xlane.xlu2 %1849 }
 0xe3a   :  { %v1856_v57 = vmul.f32 %v1850_v60, %v2424_v14 }
 0xe3c   :  { %v3439_v16 = vsub.f32 %v1838_v13, %v1856_v57 }
 0xe3e   :  { %v1864_v8 = vmul.f32 %v3439_v16, %v3439_v16 }
 0xe40   :  { %v1872_v27 = vsel %vm79_vm0, %v1864_v8, 0.0 }
 0xe41   :  { %1873 = vadd.xlane.f32.xlu0 %v1872_v27 }
 0xe5d   :  { %v1853_v20 = vpop.xlane.xlu0 %1852 }
 0xe5e   :  { %v1857_v11 = vmul.f32 %v1853_v20, %v2424_v14 }
 0xe60   :  { %v3445_v58 = vsub.f32 %v1839_v6, %v1857_v11 }
 0xe62   :  { %v1865_v51 = vmul.f32 %v3445_v58, %v3445_v58 }
 0xe64   :  { %v1875_v4 = vsel %vm79_vm0, %v1865_v51, 0.0 }
 0xe65   :  { %1876 = vadd.xlane.f32.xlu1 %v1875_v4 }
 0xea4   :  { %v1868_v53 = vpop.xlane.xlu1 %1867 }
 0xea5   :  { %v1878_v35 = vmul.f32 %v1868_v53, %v2424_v14 }
 0xea7   :  { %v1882_v10 = vadd.f32 1e-05, %v1878_v35 }
 0xea9   :  { %2257 = vrsqrt.f32 %v1882_v10  ;;  %vm1892_vm8 = vweird.f32 %v1882_v10 }
 0xeac   :  { %v1871_v46 = vpop.xlane.xlu2 %1870 }
 0xead   :  { %v1879_v47 = vmul.f32 %v1871_v46, %v2424_v14 }
 0xeaf   :  { %v2258_v17 = vpop.eup %2257  ;;  %v1883_v24 = vadd.f32 1e-05, %v1879_v47 }
 0xeb0   :  { %v1887_v1 = vmul.f32 %v2258_v17, %v1882_v10  ;;  %vm1893_vm7 = vweird.f32 %v2258_v17 }
 0xeb1   :  { %2259 = vrsqrt.f32 %v1883_v24  ;;  %vm1894_vm9 = vmor %vm1892_vm8, %vm1893_vm7  ;;  %vm1902_vm11 = vweird.f32 %v1883_v24 }
 0xeb2   :  { %v1888_v3 = vmul.f32 %v2258_v17, %v1887_v1 }
 0xeb4   :  { %v1889_v26 = vmul.f32 0.5, %v1888_v3  ;;  %v1874_v36 = vpop.xlane.xlu0 %1873 }
 0xeb5   :  { %v1880_v2 = vmul.f32 %v1874_v36, %v2424_v14 }
 0xeb6   :  { %v1890_v39 = vsub.f32 1.5, %v1889_v26 }
 0xeb7   :  { %v2260_v9 = vpop.eup %2259  ;;  %v1884_v43 = vadd.f32 1e-05, %v1880_v2 }
 0xeb8   :  { %v1891_v62 = vmul.f32 %v2258_v17, %v1890_v39  ;;  %v1897_v59 = vmul.f32 %v2260_v9, %v1883_v24  ;;  %vm1903_vm10 = vweird.f32 %v2260_v9 }
 0xeb9   :  { %2261 = vrsqrt.f32 %v1884_v43  ;;  %vm1904_vm12 = vmor %vm1902_vm11, %vm1903_vm10  ;;  %vm1912_vm14 = vweird.f32 %v1884_v43 }
 0xeba   :  { %v1895_v61 = vsel %vm1894_vm9, %v2258_v17, %v1891_v62  ;;  %v1898_v44 = vmul.f32 %v2260_v9, %v1897_v59 }
 0xebb   :  { %v1926_v7 = vmul.f32 %v1895_v61, %v1858_v21 }
 0xebc   :  { %v1899_v42 = vmul.f32 0.5, %v1898_v44 }
 0xebd   :  { %v1933_v50 = vmul.f32 %v2173_v33, %v1926_v7 }
 0xebe   :  { %v1900_v34 = vsub.f32 1.5, %v1899_v42 }
 0xebf   :  { %v2262_v55 = vpop.eup %2261  ;;  %v1940_v30 = vadd.f32 %v2174_v32, %v1933_v50 }
 0xec0   :  { %v1901_v15 = vmul.f32 %v2260_v9, %v1900_v34  ;;  %v1907_v37 = vmul.f32 %v2262_v55, %v1884_v43  ;;  %vm1913_vm13 = vweird.f32 %v2262_v55 }
 0xec1   :  { %1944 = vst.msk [vmem:[#allocation2] sm:$0xff] %vm79_vm0, %v1940_v30  ;;  %vm1914_vm15 = vmor %vm1912_vm14, %vm1913_vm13 }
 0xec2   :  { %v1905_v18 = vsel %vm1904_vm12, %v2260_v9, %v1901_v15  ;;  %v1908_v63 = vmul.f32 %v2262_v55, %v1907_v37 }
 0xec3   :  { %v1927_v38 = vmul.f32 %v1905_v18, %v1859_v56 }
 0xec4   :  { %v1909_v48 = vmul.f32 0.5, %v1908_v63 }
 0xec5   :  { %v1934_v5 = vmul.f32 %v2173_v33, %v1927_v38 }
 0xec6   :  { %v1910_v29 = vsub.f32 1.5, %v1909_v48 }
 0xec7   :  { %v1941_v40 = vadd.f32 %v2174_v32, %v1934_v5 }
 0xec8   :  { %v1911_v0 = vmul.f32 %v2262_v55, %v1910_v29 }
 0xec9   :  { %1945 = vst.msk [vmem:[#allocation2 + $0x8] sm:$0xff] %vm79_vm0, %v1941_v40 }
 0xeca   :  { %v1915_v13 = vsel %vm1914_vm15, %v2262_v55, %v1911_v0 }
 0xecb   :  { %v1928_v41 = vmul.f32 %v1915_v13, %v3439_v16 }
 0xecd   :  { %v1935_v49 = vmul.f32 %v2173_v33, %v1928_v41 }
 0xecf   :  { %v1942_v28 = vadd.f32 %v2174_v32, %v1935_v49 }
 0xed1   :  { %1946 = vst.msk [vmem:[#allocation2 + $0x10] sm:$0xff] %vm79_vm0, %v1942_v28 }
 0xed8   :  { %v1877_v6 = vpop.xlane.xlu1 %1876 }
 0xed9   :  { %v1881_v23 = vmul.f32 %v1877_v6, %v2424_v14 }
 0xedb   :  { %v1885_v22 = vadd.f32 1e-05, %v1881_v23 }
 0xedd   :  { %2263 = vrsqrt.f32 %v1885_v22  ;;  %vm1922_vm2 = vweird.f32 %v1885_v22 }
 0xee3   :  { %v2264_v52 = vpop.eup %2263 }
 0xee4   :  { %v1917_v21 = vmul.f32 %v2264_v52, %v1885_v22  ;;  %vm1923_vm1 = vweird.f32 %v2264_v52 }
 0xee5   :  { %vm1924_vm3 = vmor %vm1922_vm2, %vm1923_vm1 }
 0xee6   :  { %v1918_v25 = vmul.f32 %v2264_v52, %v1917_v21 }
 0xee8   :  { %v1919_v31 = vmul.f32 0.5, %v1918_v25 }
 0xeea   :  { %v1920_v12 = vsub.f32 1.5, %v1919_v31 }
 0xeec   :  { %v1921_v45 = vmul.f32 %v2264_v52, %v1920_v12 }
 0xeee   :  { %v1925_v56 = vsel %vm1924_vm3, %v2264_v52, %v1921_v45 }
 0xeef   :  { %v1929_v54 = vmul.f32 %v1925_v56, %v3445_v58 }
 0xef1   :  { %v1936_v14 = vmul.f32 %v2173_v33, %v1929_v54 }
 0xef3   :  { %v1943_v19 = vadd.f32 %v2174_v32, %v1936_v14 }
 0xef5   :  { %1947 = vst.msk [vmem:[#allocation2 + $0x18] sm:$0xff] %vm79_vm0, %v1943_v19 }
 0xef6   :  { %1960 = dma.vmem_to_hbm [thread:$0]  %s1953_s16, 512, %s1955_s23, [#allocation3], %s2316_s3, %s2316_s3, %s2317_s4  }
 0xef7   :  { %2309 = dma.done.wait [#allocation3], 512  }
 0xef8   :  { %2310 = vsyncadd [#allocation3], 4294966784 }
 0xef9   :  { %1965 = vsyncpa [#allocation3], 1 }

</bundles_post_ra>
